<compile_context>
chip_gen: v7x
topology: tpu7x:2x2x1
jax: 0.10.0
libtpu: 0.0.40
codegen_flags: <defaults>
</compile_context>

<pallas_src>
import jax
import jax.numpy as jnp
from jax.experimental import pallas as pl
from jax.experimental.pallas import tpu as pltpu  # noqa: F401  (TPU backend extensions)

LATENT_DIM = 10
H1 = 256
H2 = 512
OUT = 28 * 28            # 784
EPS = 1e-5
NEG_SLOPE = 0.01         # PyTorch nn.LeakyReLU default

# Packed per-feature-vector slab row layout (f32, shape (8, OUT)):
ROW_G1, ROW_BE1, ROW_G2, ROW_BE2, ROW_B3, ROW_S2, ROW_S3 = 0, 1, 2, 3, 4, 5, 6


def _bn_lrelu(h, gamma, beta):
    """BatchNorm1d (training mode: batch stats, biased var) + LeakyReLU(0.01).

    One-pass stats + folded scale: hn = h * s + (beta - mu * s),
    with s = gamma * rsqrt(var + eps).  var clamped to >= 0 for robustness.
    """
    mu = jnp.mean(h, axis=0, keepdims=True)
    ex2 = jnp.mean(h * h, axis=0, keepdims=True)
    var = jnp.maximum(ex2 - mu * mu, 0.0)
    s = gamma * jax.lax.rsqrt(var + EPS)
    hn = h * s + (beta - mu * s)
    return jnp.where(hn >= 0, hn, NEG_SLOPE * hn)


def decoder_kernel(x_ref, w1_ref, w2q_ref, w3q_ref, pvec_ref, out_ref):
    # Static slice-loads straight off the VMEM slab ref (no full-slab load).
    g1 = pvec_ref[ROW_G1:ROW_G1 + 1, :H1]
    be1 = pvec_ref[ROW_BE1:ROW_BE1 + 1, :H1]
    g2 = pvec_ref[ROW_G2:ROW_G2 + 1, :H2]
    be2 = pvec_ref[ROW_BE2:ROW_BE2 + 1, :H2]
    s2 = pvec_ref[ROW_S2:ROW_S2 + 1, :H2]
    s3 = pvec_ref[ROW_S3:ROW_S3 + 1, :]
    b3 = pvec_ref[ROW_B3:ROW_B3 + 1, :]

    x = x_ref[...]

    # Layer 1: Linear(10 -> 256) [bias dropped: cancelled by BN] + BN + LeakyReLU
    h1 = jnp.dot(x.astype(jnp.bfloat16), w1_ref[...],
                 preferred_element_type=jnp.float32)
    h1 = _bn_lrelu(h1, g1, be1)

    # Layer 2: int8 weights -> exact bf16 cast (VPU slack), per-column dequant
    # scale folded into one post-dot multiply; bias dropped (cancelled by BN).
    w2 = w2q_ref[...].astype(jnp.bfloat16)
    h2 = jnp.dot(h1.astype(jnp.bfloat16), w2,
                 preferred_element_type=jnp.float32) * s2
    h2 = _bn_lrelu(h2, g2, be2)

    # Layer 3: int8 weights + per-column dequant scale + bias.  Output stored
    # directly at 784 lanes (no padded slab / no wrapper slice).
    w3 = w3q_ref[...].astype(jnp.bfloat16)
    out_ref[...] = (jnp.dot(h2.astype(jnp.bfloat16), w3,
                            preferred_element_type=jnp.float32) * s3 + b3)


def decoder_forward(x, params):
    B = x.shape[0]
    args = (x, params["w1"], params["w2q"], params["w3q"], params["pvec"])
    # All args are 2-D, whole-array blocks, single grid point (everything is
    # VMEM-resident; ~1 MB total).  Lambdas capture nothing (no late binding).
    in_specs = [pl.BlockSpec(a.shape, lambda: (0, 0)) for a in args]
    return pl.pallas_call(
        decoder_kernel,
        out_shape=jax.ShapeDtypeStruct((B, OUT), jnp.float32),
        grid=(),
        in_specs=in_specs,
        out_specs=pl.BlockSpec((B, OUT), lambda: (0, 0)),
    )(*args)


def _quantize_per_column(w):
    """Symmetric int8 quantization with one scale per output column."""
    scale = jnp.max(jnp.abs(w), axis=0) / 127.0
    scale = jnp.maximum(scale, 1e-12)
    q = jnp.clip(jnp.round(w / scale), -127, 127).astype(jnp.int8)
    return q, scale.astype(jnp.float32)


def init_params(key):
    ks = jax.random.split(key, 8)

    def linear_w(k, fan_in, fan_out):
        bound = 1.0 / jnp.sqrt(fan_in)
        return jax.random.uniform(k, (fan_in, fan_out), jnp.float32, -bound, bound)

    w1 = linear_w(ks[0], LATENT_DIM, H1)
    w2 = linear_w(ks[1], H1, H2)
    w3 = linear_w(ks[2], H2, OUT)
    b3 = jax.random.uniform(ks[3], (OUT,), jnp.float32,
                            -1.0 / jnp.sqrt(H2), 1.0 / jnp.sqrt(H2))

    # Random (non-default) BN affine params so the check exercises the full math.
    g1 = jax.random.uniform(ks[4], (H1,), jnp.float32, 0.5, 1.5)
    be1 = 0.1 * jax.random.normal(ks[5], (H1,), jnp.float32)
    g2 = jax.random.uniform(ks[6], (H2,), jnp.float32, 0.5, 1.5)
    be2 = 0.1 * jax.random.normal(ks[7], (H2,), jnp.float32)

    # NOTE: Linear-1/Linear-2 biases are intentionally absent — they are
    # mathematically cancelled by the BatchNorm mean subtraction.

    w2q, s2 = _quantize_per_column(w2)
    w3q, s3 = _quantize_per_column(w3)

    # One packed slab for all per-feature vectors -> a single input DMA.
    pvec = jnp.zeros((8, OUT), jnp.float32)
    pvec = pvec.at[ROW_G1, :H1].set(g1)
    pvec = pvec.at[ROW_BE1, :H1].set(be1)
    pvec = pvec.at[ROW_G2, :H2].set(g2)
    pvec = pvec.at[ROW_BE2, :H2].set(be2)
    pvec = pvec.at[ROW_B3, :].set(b3)
    pvec = pvec.at[ROW_S2, :H2].set(s2)
    pvec = pvec.at[ROW_S3, :].set(s3)

    return {
        "w1": w1.astype(jnp.bfloat16),   # tiny (10x256); not worth quantizing
        "w2q": w2q,                      # int8, per-column scale in pvec[ROW_S2]
        "w3q": w3q,                      # int8, per-column scale in pvec[ROW_S3]
        "pvec": pvec,
    }


def decoder_reference(x, p):
    """Pure-JAX reference with the same dtypes/quantization/ops as the kernel."""
    pv = p["pvec"]
    g1, be1 = pv[ROW_G1:ROW_G1 + 1, :H1], pv[ROW_BE1:ROW_BE1 + 1, :H1]
    g2, be2 = pv[ROW_G2:ROW_G2 + 1, :H2], pv[ROW_BE2:ROW_BE2 + 1, :H2]
    s2 = pv[ROW_S2:ROW_S2 + 1, :H2]
    s3 = pv[ROW_S3:ROW_S3 + 1, :]
    b3 = pv[ROW_B3:ROW_B3 + 1, :]

    def bn_lrelu(h, g, b):
        mu = jnp.mean(h, axis=0, keepdims=True)
        var = jnp.maximum(jnp.mean(h * h, axis=0, keepdims=True) - mu * mu, 0.0)
        s = g * jax.lax.rsqrt(var + EPS)
        hn = h * s + (b - mu * s)
        return jnp.where(hn >= 0, hn, NEG_SLOPE * hn)

    h = jnp.dot(x.astype(jnp.bfloat16), p["w1"], preferred_element_type=jnp.float32)
    h = bn_lrelu(h, g1, be1)
    h = jnp.dot(h.astype(jnp.bfloat16), p["w2q"].astype(jnp.bfloat16),
                preferred_element_type=jnp.float32) * s2
    h = bn_lrelu(h, g2, be2)
    return jnp.dot(h.astype(jnp.bfloat16), p["w3q"].astype(jnp.bfloat16),
                   preferred_element_type=jnp.float32) * s3 + b3


if __name__ == "__main__":
    key = jax.random.PRNGKey(0)
    kx, kp = jax.random.split(key)
    B = 64   # amortizes the (dominant) per-call weight fetch over 8x more rows
    x = jax.random.normal(kx, (B, LATENT_DIM), jnp.float32)
    params = init_params(kp)

    out = decoder_forward(x, params)
    out = jax.block_until_ready(out)

    ref = decoder_reference(x, params)
    assert out.shape == (B, OUT), out.shape
    # Tolerance covers bf16 matmul operands (f32 accumulation) and
    # Mosaic-vs-XLA summation-order differences; quantization is identical in
    # kernel and reference, so it contributes no mismatch.
    assert jnp.allclose(out, ref, atol=1e-2, rtol=1e-2), "mismatch vs reference"

    print("KERNEL_OK")
</pallas_src>

<mosaic_0001>
module attributes {stable_mosaic.version = 11 : i64} {
  func.func @decoder_kernel(%arg0: memref<64x10xf32, #tpu.memory_space<vmem>>, %arg1: memref<10x256xbf16, #tpu.memory_space<vmem>>, %arg2: memref<256x512xi8, #tpu.memory_space<vmem>>, %arg3: memref<512x784xi8, #tpu.memory_space<vmem>>, %arg4: memref<8x784xf32, #tpu.memory_space<vmem>>, %arg5: memref<64x784xf32, #tpu.memory_space<vmem>>) attributes {dimension_semantics = [], scalar_prefetch = 0 : i64, scratch_operands = 0 : i64, tpu.core_type = #tpu.core_type<tc>} {
    %c0 = arith.constant 0 : index
    %c0_0 = arith.constant 0 : index
    %0 = vector.load %arg4[%c0, %c0_0] : memref<8x784xf32, #tpu.memory_space<vmem>>, vector<1x256xf32>
    %c1 = arith.constant 1 : index
    %c0_1 = arith.constant 0 : index
    %1 = vector.load %arg4[%c1, %c0_1] : memref<8x784xf32, #tpu.memory_space<vmem>>, vector<1x256xf32>
    %c2 = arith.constant 2 : index
    %c0_2 = arith.constant 0 : index
    %2 = vector.load %arg4[%c2, %c0_2] : memref<8x784xf32, #tpu.memory_space<vmem>>, vector<1x512xf32>
    %c3 = arith.constant 3 : index
    %c0_3 = arith.constant 0 : index
    %3 = vector.load %arg4[%c3, %c0_3] : memref<8x784xf32, #tpu.memory_space<vmem>>, vector<1x512xf32>
    %c5 = arith.constant 5 : index
    %c0_4 = arith.constant 0 : index
    %4 = vector.load %arg4[%c5, %c0_4] : memref<8x784xf32, #tpu.memory_space<vmem>>, vector<1x512xf32>
    %c6 = arith.constant 6 : index
    %c0_5 = arith.constant 0 : index
    %5 = vector.load %arg4[%c6, %c0_5] : memref<8x784xf32, #tpu.memory_space<vmem>>, vector<1x784xf32>
    %c4 = arith.constant 4 : index
    %c0_6 = arith.constant 0 : index
    %6 = vector.load %arg4[%c4, %c0_6] : memref<8x784xf32, #tpu.memory_space<vmem>>, vector<1x784xf32>
    %c0_7 = arith.constant 0 : index
    %c0_8 = arith.constant 0 : index
    %7 = vector.load %arg0[%c0_7, %c0_8] : memref<64x10xf32, #tpu.memory_space<vmem>>, vector<64x10xf32>
    %8 = arith.truncf %7 : vector<64x10xf32> to vector<64x10xbf16>
    %c0_9 = arith.constant 0 : index
    %c0_10 = arith.constant 0 : index
    %9 = vector.load %arg1[%c0_9, %c0_10] : memref<10x256xbf16, #tpu.memory_space<vmem>>, vector<10x256xbf16>
    %cst = arith.constant dense<0.000000e+00> : vector<64x256xf32>
    %10 = tpu.matmul %8, %9, %cst {dimension_numbers = #tpu.dot_dimension_numbers<[1], [0], [0], [1], [0, 0, 1, 1], [], []>} : vector<64x10xbf16>, vector<10x256xbf16>, vector<64x256xf32> -> vector<64x256xf32>
    %cst_11 = arith.constant dense<0.000000e+00> : vector<256xf32>
    %11 = vector.multi_reduction <add>, %10, %cst_11 [0] : vector<64x256xf32> to vector<256xf32>
    %12 = vector.shape_cast %11 : vector<256xf32> to vector<1x256xf32>
    %cst_12 = arith.constant 6.400000e+01 : f32
    %13 = vector.broadcast %cst_12 : f32 to vector<1x256xf32>
    %14 = arith.divf %12, %13 : vector<1x256xf32>
    %15 = arith.mulf %10, %10 : vector<64x256xf32>
    %cst_13 = arith.constant dense<0.000000e+00> : vector<256xf32>
    %16 = vector.multi_reduction <add>, %15, %cst_13 [0] : vector<64x256xf32> to vector<256xf32>
    %17 = vector.shape_cast %16 : vector<256xf32> to vector<1x256xf32>
    %cst_14 = arith.constant 6.400000e+01 : f32
    %18 = vector.broadcast %cst_14 : f32 to vector<1x256xf32>
    %19 = arith.divf %17, %18 : vector<1x256xf32>
    %20 = arith.mulf %14, %14 : vector<1x256xf32>
    %21 = arith.subf %19, %20 : vector<1x256xf32>
    %cst_15 = arith.constant 0.000000e+00 : f32
    %22 = vector.broadcast %cst_15 : f32 to vector<1x256xf32>
    %23 = arith.maximumf %21, %22 : vector<1x256xf32>
    %cst_16 = arith.constant 9.99999974E-6 : f32
    %24 = vector.broadcast %cst_16 : f32 to vector<1x256xf32>
    %25 = arith.addf %23, %24 : vector<1x256xf32>
    %26 = math.rsqrt %25 : vector<1x256xf32>
    %27 = arith.mulf %0, %26 : vector<1x256xf32>
    %28 = vector.broadcast %27 : vector<1x256xf32> to vector<64x256xf32>
    %29 = arith.mulf %10, %28 : vector<64x256xf32>
    %30 = arith.mulf %14, %27 : vector<1x256xf32>
    %31 = arith.subf %1, %30 : vector<1x256xf32>
    %32 = vector.broadcast %31 : vector<1x256xf32> to vector<64x256xf32>
    %33 = arith.addf %29, %32 : vector<64x256xf32>
    %cst_17 = arith.constant 0.000000e+00 : f32
    %34 = vector.broadcast %cst_17 : f32 to vector<64x256xf32>
    %35 = arith.cmpf oge, %33, %34 : vector<64x256xf32>
    %cst_18 = arith.constant 0.00999999977 : f32
    %36 = vector.broadcast %cst_18 : f32 to vector<64x256xf32>
    %37 = arith.mulf %36, %33 : vector<64x256xf32>
    %38 = arith.select %35, %33, %37 : vector<64x256xi1>, vector<64x256xf32>
    %c0_19 = arith.constant 0 : index
    %c0_20 = arith.constant 0 : index
    %39 = vector.load %arg2[%c0_19, %c0_20] : memref<256x512xi8, #tpu.memory_space<vmem>>, vector<256x512xi8>
    %40 = arith.sitofp %39 : vector<256x512xi8> to vector<256x512xbf16>
    %41 = arith.truncf %38 : vector<64x256xf32> to vector<64x256xbf16>
    %cst_21 = arith.constant dense<0.000000e+00> : vector<64x512xf32>
    %42 = tpu.matmul %41, %40, %cst_21 {dimension_numbers = #tpu.dot_dimension_numbers<[1], [0], [0], [1], [0, 0, 1, 1], [], []>} : vector<64x256xbf16>, vector<256x512xbf16>, vector<64x512xf32> -> vector<64x512xf32>
    %43 = vector.broadcast %4 : vector<1x512xf32> to vector<64x512xf32>
    %44 = arith.mulf %42, %43 : vector<64x512xf32>
    %cst_22 = arith.constant dense<0.000000e+00> : vector<512xf32>
    %45 = vector.multi_reduction <add>, %44, %cst_22 [0] : vector<64x512xf32> to vector<512xf32>
    %46 = vector.shape_cast %45 : vector<512xf32> to vector<1x512xf32>
    %cst_23 = arith.constant 6.400000e+01 : f32
    %47 = vector.broadcast %cst_23 : f32 to vector<1x512xf32>
    %48 = arith.divf %46, %47 : vector<1x512xf32>
    %49 = arith.mulf %44, %44 : vector<64x512xf32>
    %cst_24 = arith.constant dense<0.000000e+00> : vector<512xf32>
    %50 = vector.multi_reduction <add>, %49, %cst_24 [0] : vector<64x512xf32> to vector<512xf32>
    %51 = vector.shape_cast %50 : vector<512xf32> to vector<1x512xf32>
    %cst_25 = arith.constant 6.400000e+01 : f32
    %52 = vector.broadcast %cst_25 : f32 to vector<1x512xf32>
    %53 = arith.divf %51, %52 : vector<1x512xf32>
    %54 = arith.mulf %48, %48 : vector<1x512xf32>
    %55 = arith.subf %53, %54 : vector<1x512xf32>
    %cst_26 = arith.constant 0.000000e+00 : f32
    %56 = vector.broadcast %cst_26 : f32 to vector<1x512xf32>
    %57 = arith.maximumf %55, %56 : vector<1x512xf32>
    %cst_27 = arith.constant 9.99999974E-6 : f32
    %58 = vector.broadcast %cst_27 : f32 to vector<1x512xf32>
    %59 = arith.addf %57, %58 : vector<1x512xf32>
    %60 = math.rsqrt %59 : vector<1x512xf32>
    %61 = arith.mulf %2, %60 : vector<1x512xf32>
    %62 = vector.broadcast %61 : vector<1x512xf32> to vector<64x512xf32>
    %63 = arith.mulf %44, %62 : vector<64x512xf32>
    %64 = arith.mulf %48, %61 : vector<1x512xf32>
    %65 = arith.subf %3, %64 : vector<1x512xf32>
    %66 = vector.broadcast %65 : vector<1x512xf32> to vector<64x512xf32>
    %67 = arith.addf %63, %66 : vector<64x512xf32>
    %cst_28 = arith.constant 0.000000e+00 : f32
    %68 = vector.broadcast %cst_28 : f32 to vector<64x512xf32>
    %69 = arith.cmpf oge, %67, %68 : vector<64x512xf32>
    %cst_29 = arith.constant 0.00999999977 : f32
    %70 = vector.broadcast %cst_29 : f32 to vector<64x512xf32>
    %71 = arith.mulf %70, %67 : vector<64x512xf32>
    %72 = arith.select %69, %67, %71 : vector<64x512xi1>, vector<64x512xf32>
    %c0_30 = arith.constant 0 : index
    %c0_31 = arith.constant 0 : index
    %73 = vector.load %arg3[%c0_30, %c0_31] : memref<512x784xi8, #tpu.memory_space<vmem>>, vector<512x784xi8>
    %74 = arith.sitofp %73 : vector<512x784xi8> to vector<512x784xbf16>
    %75 = arith.truncf %72 : vector<64x512xf32> to vector<64x512xbf16>
    %cst_32 = arith.constant dense<0.000000e+00> : vector<64x784xf32>
    %76 = tpu.matmul %75, %74, %cst_32 {dimension_numbers = #tpu.dot_dimension_numbers<[1], [0], [0], [1], [0, 0, 1, 1], [], []>} : vector<64x512xbf16>, vector<512x784xbf16>, vector<64x784xf32> -> vector<64x784xf32>
    %77 = vector.broadcast %5 : vector<1x784xf32> to vector<64x784xf32>
    %78 = arith.mulf %76, %77 : vector<64x784xf32>
    %79 = vector.broadcast %6 : vector<1x784xf32> to vector<64x784xf32>
    %80 = arith.addf %78, %79 : vector<64x784xf32>
    %c0_33 = arith.constant 0 : index
    %c0_34 = arith.constant 0 : index
    %81 = vector.load %arg5[%c0_33, %c0_34] : memref<64x784xf32, #tpu.memory_space<vmem>>, vector<64x784xf32>
    tpu.vector_store %arg5[%c0_33, %c0_34], %80 {strides = array<i32>} : memref<64x784xf32, #tpu.memory_space<vmem>>, vector<64x784xf32>,
    return
  }
}

</mosaic_0001>

<bundles_post_ra>
// kernel: tpu_custom_call.1
= control target key start
LH: loop header
LB: loop body
LE: loop exit
PB: predicated region body
PF: predicated region fallthrough
CT: control target
= control target key end

     0   :  { %vm74_vm0 = vcmask 1044480   ;;  %v2476_v3 = vmov 0   ;;  %vm61_vm1 = vcmask 80896   ;;  %s3917_s0 = inlined_call_operand.vmem [shape: f32[64,10], index: 0, kind: input, shape index: {}]   ;;  %s3918_s1 = inlined_call_operand.vmem [shape: bf16[10,256], index: 1, kind: input, shape index: {}]   ;;  %s3919_s2 = inlined_call_operand.vmem [shape: s8[256,512], index: 2, kind: input, shape index: {}]   ;;  %s3920_s3 = inlined_call_operand.vmem [shape: s8[512,784], index: 3, kind: input, shape index: {}]   ;;  %s3921_s4 = inlined_call_operand.vmem [shape: f32[8,784], index: 4, kind: input, shape index: {}]   ;;  %s3922_s5 = inlined_call_operand.hbm [shape: f32[64,784], index: 5, kind: output, shape index: {}]  }
   0x1   :  { %v2437_v0 = vld [vmem:[%s3918_s1 + $0x4] ss:$8 sps:$4 sm:$0x1f]   ;;  %v2439_v1 = vld [vmem:[%s3918_s1] ss:$8 sps:$4 sm:$0x1f]   ;;  %113 = vmatprep.mubr.bf16.mxu0 %v2476_v3 }
   0x2   :  { %v39_v2 = vld [vmem:[%s3917_s0] sm:$0xff]  ;;  %2299 = vmatprep.subr.msk.bf16.mxu0 %vm74_vm0, %v2437_v0  ;;  %v40_v4 = vld [vmem:[%s3917_s0 + $0x8] sm:$0xff]  ;;  %v76_v5 = vsel %vm74_vm0, %v2439_v1, 0 }
   0x3   :  { %v47_v6 = vpack.c.bf16 %v40_v4, %v39_v2  ;;  %82 = vmatpush1.bf16.msra.mxu0 %v76_v5 }
   0x4   :  { %10 = vsyncpa [#allocation3], 0  ;;  %v41_v7 = vld [vmem:[%s3917_s0 + $0x10] sm:$0xff]  ;;  %v42_v8 = vld [vmem:[%s3917_s0 + $0x18] sm:$0xff] }
   0x5   :  { %v48_v9 = vpack.c.bf16 %v42_v8, %v41_v7  ;;  %v43_v10 = vld [vmem:[%s3917_s0 + $0x20] sm:$0xff]  ;;  %v44_v11 = vld [vmem:[%s3917_s0 + $0x28] sm:$0xff]  ;;  %v45_v13 = vld [vmem:[%s3917_s0 + $0x30] sm:$0xff] }
   0x6   :  { %2300 = vmatmul.mubr.msk.bf16.vlgmr.msra.gmra.mrb[0].mxu0 %vm61_vm1, %v47_v6  ;;  %v49_v12 = vpack.c.bf16 %v44_v11, %v43_v10  ;;  %v46_v14 = vld [vmem:[%s3917_s0 + $0x38] sm:$0xff]  ;;  %v380_v16 = vld [vmem:[%s3919_s2 + $0x8] sm:$0xff]  ;;  %v379_v20 = vld [vmem:[%s3919_s2] sm:$0xff] }
   0x7   :  { %123 = vmatprep.mubr.bf16.mxu0 %v2476_v3  ;;  %v50_v15 = vpack.c.bf16 %v46_v14, %v45_v13  ;;  %v382_v17 = vld [vmem:[%s3919_s2 + $0x18] sm:$0xff]  ;;  %v412_v18 = vunpack.c.l.s8.bf16 %v380_v16  ;;  %v381_v21 = vld [vmem:[%s3919_s2 + $0x10] sm:$0xff]  ;;  %v411_v22 = vunpack.c.l.s8.bf16 %v379_v20  ;;  %v416_v24 = vunpack.c.h.s8.bf16 %v380_v16  ;;  %v384_v28 = vld [vmem:[%s3919_s2 + $0x28] sm:$0xff] }
   0x8   :  { %v414_v19 = vunpack.c.l.s8.bf16 %v382_v17  ;;  %v413_v23 = vunpack.c.l.s8.bf16 %v381_v21  ;;  %v418_v25 = vunpack.c.h.s8.bf16 %v382_v17  ;;  %v415_v26 = vunpack.c.h.s8.bf16 %v379_v20  ;;  %v386_v29 = vld [vmem:[%s3919_s2 + $0x38] sm:$0xff]  ;;  %v383_v32 = vld [vmem:[%s3919_s2 + $0x20] sm:$0xff]  ;;  %v385_v33 = vld [vmem:[%s3919_s2 + $0x30] sm:$0xff] }
   0x9   :  { %483 = vmatprep.subr.bf16.mxu1 %v412_v18  ;;  %v417_v27 = vunpack.c.h.s8.bf16 %v381_v21  ;;  %v420_v30 = vunpack.c.l.s8.bf16 %v384_v28  ;;  %v422_v31 = vunpack.c.l.s8.bf16 %v386_v29  ;;  %v419_v34 = vunpack.c.l.s8.bf16 %v383_v32  ;;  %v388_v40 = vld [vmem:[%s3919_s2 + $0x48] sm:$0xff]  ;;  %v390_v41 = vld [vmem:[%s3919_s2 + $0x58] sm:$0xff]  ;;  %v387_v44 = vld [vmem:[%s3919_s2 + $0x40] sm:$0xff] }
   0xa   :  { %556 = vmatprep.subr.bf16.mxu0 %v414_v19  ;;  %484 = vmatpush1.bf16.msra.mxu1 %v411_v22  ;;  %v421_v35 = vunpack.c.l.s8.bf16 %v385_v33  ;;  %v424_v36 = vunpack.c.h.s8.bf16 %v384_v28  ;;  %v426_v37 = vunpack.c.h.s8.bf16 %v386_v29  ;;  %v423_v38 = vunpack.c.h.s8.bf16 %v383_v32  ;;  %v389_v45 = vld [vmem:[%s3919_s2 + $0x50] sm:$0xff]  ;;  %v392_v52 = vld [vmem:[%s3919_s2 + $0x68] sm:$0xff]  ;;  %v394_v53 = vld [vmem:[%s3919_s2 + $0x78] sm:$0xff] }
   0xb   :  { %557 = vmatpush1.bf16.msra.mxu0 %v413_v23  ;;  %485 = vmatprep.subr.bf16.mxu1 %v416_v24  ;;  %v425_v39 = vunpack.c.h.s8.bf16 %v385_v33  ;;  %v428_v42 = vunpack.c.l.s8.bf16 %v388_v40  ;;  %v430_v43 = vunpack.c.l.s8.bf16 %v390_v41  ;;  %v427_v46 = vunpack.c.l.s8.bf16 %v387_v44  ;;  %v391_v56 = vld [vmem:[%s3919_s2 + $0x60] sm:$0xff]  ;;  %v393_v57 = vld [vmem:[%s3919_s2 + $0x70] sm:$0xff]  ;;  %v396_v0 = vld [vmem:[%s3919_s2 + $0x88] sm:$0xff] }
   0xc   :  { %558 = vmatprep.subr.bf16.mxu0 %v418_v25  ;;  %v429_v47 = vunpack.c.l.s8.bf16 %v389_v45  ;;  %v432_v48 = vunpack.c.h.s8.bf16 %v388_v40  ;;  %v434_v49 = vunpack.c.h.s8.bf16 %v390_v41  ;;  %v431_v50 = vunpack.c.h.s8.bf16 %v387_v44  ;;  %v398_v1 = vld [vmem:[%s3919_s2 + $0x98] sm:$0xff]  ;;  %v395_v4 = vld [vmem:[%s3919_s2 + $0x80] sm:$0xff]  ;;  %v397_v5 = vld [vmem:[%s3919_s2 + $0x90] sm:$0xff] }
   0xd   :  { %v433_v51 = vunpack.c.h.s8.bf16 %v389_v45  ;;  %v436_v54 = vunpack.c.l.s8.bf16 %v392_v52  ;;  %v438_v55 = vunpack.c.l.s8.bf16 %v394_v53  ;;  %v435_v58 = vunpack.c.l.s8.bf16 %v391_v56  ;;  %v402_v13 = vld [vmem:[%s3919_s2 + $0xb8] sm:$0xff]  ;;  %v399_v16 = vld [vmem:[%s3919_s2 + $0xa0] sm:$0xff]  ;;  %v401_v17 = vld [vmem:[%s3919_s2 + $0xb0] sm:$0xff] }
   0xe   :  { %2301 = vmatmul.mubr.msk.bf16.gmra.mrb[4].mxu0 %vm61_vm1, %v48_v9  ;;  %486 = vmatpush1.bf16.msra.mxu1 %v415_v26  ;;  %v437_v59 = vunpack.c.l.s8.bf16 %v393_v57  ;;  %v440_v60 = vunpack.c.h.s8.bf16 %v392_v52  ;;  %v442_v61 = vunpack.c.h.s8.bf16 %v394_v53  ;;  %v439_v62 = vunpack.c.h.s8.bf16 %v391_v56  ;;  %v404_v24 = vld [vmem:[%s3919_s2 + $0xc8] sm:$0xff]  ;;  %v406_v25 = vld [vmem:[%s3919_s2 + $0xd8] sm:$0xff]  ;;  %v403_v28 = vld [vmem:[%s3919_s2 + $0xc0] sm:$0xff] }
   0xf   :  { %133 = vmatprep.mubr.bf16.mxu0 %v2476_v3  ;;  %559 = vmatpush1.bf16.msra.mxu0 %v417_v27  ;;  %v441_v63 = vunpack.c.h.s8.bf16 %v393_v57  ;;  %v444_v2 = vunpack.c.l.s8.bf16 %v396_v0  ;;  %v443_v6 = vunpack.c.l.s8.bf16 %v395_v4  ;;  %v445_v7 = vunpack.c.l.s8.bf16 %v397_v5  ;;  %v405_v29 = vld [vmem:[%s3919_s2 + $0xd0] sm:$0xff]  ;;  %v407_v40 = vld [vmem:[%s3919_s2 + $0xe0] sm:$0xff] }
  0x10   :  { %487 = vmatprep.subr.bf16.mxu1 %v420_v30  ;;  %560 = vmatprep.subr.bf16.mxu0 %v422_v31  ;;  %v448_v8 = vunpack.c.h.s8.bf16 %v396_v0  ;;  %v450_v9 = vunpack.c.h.s8.bf16 %v398_v1  ;;  %v447_v10 = vunpack.c.h.s8.bf16 %v395_v4  ;;  %v449_v11 = vunpack.c.h.s8.bf16 %v397_v5  ;;  %v409_v41 = vld [vmem:[%s3919_s2 + $0xf0] sm:$0xff] }
  0x11   :  { %v451_v18 = vunpack.c.l.s8.bf16 %v399_v16  ;;  %v453_v19 = vunpack.c.l.s8.bf16 %v401_v17  ;;  %v458_v21 = vunpack.c.h.s8.bf16 %v402_v13  ;;  %v455_v22 = vunpack.c.h.s8.bf16 %v399_v16 }
  0x12   :  { %488 = vmatpush1.bf16.msra.mxu1 %v419_v34  ;;  %v457_v23 = vunpack.c.h.s8.bf16 %v401_v17  ;;  %v460_v26 = vunpack.c.l.s8.bf16 %v404_v24  ;;  %v462_v27 = vunpack.c.l.s8.bf16 %v406_v25  ;;  %v459_v30 = vunpack.c.l.s8.bf16 %v403_v28 }
  0x13   :  { %561 = vmatpush1.bf16.msra.mxu0 %v421_v35  ;;  %489 = vmatprep.subr.bf16.mxu1 %v424_v36  ;;  %v461_v31 = vunpack.c.l.s8.bf16 %v405_v29  ;;  %v464_v32 = vunpack.c.h.s8.bf16 %v404_v24  ;;  %v466_v33 = vunpack.c.h.s8.bf16 %v406_v25  ;;  %v463_v34 = vunpack.c.h.s8.bf16 %v403_v28  ;;  %v408_v36 = vld [vmem:[%s3919_s2 + $0xe8] sm:$0xff] }
  0x14   :  { %562 = vmatprep.subr.bf16.mxu0 %v426_v37  ;;  %v465_v35 = vunpack.c.h.s8.bf16 %v405_v29  ;;  %v410_v37 = vld [vmem:[%s3919_s2 + $0xf8] sm:$0xff]  ;;  %v472_v44 = vunpack.c.h.s8.bf16 %v408_v36 }
  0x15   :  { %v474_v45 = vunpack.c.h.s8.bf16 %v410_v37 }
  0x16   :  { %2302 = vmatmul.mubr.msk.bf16.gmra.mrb[8].mxu0 %vm61_vm1, %v49_v12  ;;  %490 = vmatpush1.bf16.msra.mxu1 %v423_v38  ;;  %v400_v12 = vld [vmem:[%s3919_s2 + $0xa8] sm:$0xff]  ;;  %v468_v38 = vunpack.c.l.s8.bf16 %v408_v36 }
  0x17   :  { %143 = vmatprep.mubr.bf16.mxu0 %v2476_v3  ;;  %563 = vmatpush1.bf16.msra.mxu0 %v425_v39  ;;  %v446_v3 = vunpack.c.l.s8.bf16 %v398_v1  ;;  %v452_v14 = vunpack.c.l.s8.bf16 %v400_v12  ;;  %v456_v20 = vunpack.c.h.s8.bf16 %v400_v12  ;;  %v470_v39 = vunpack.c.l.s8.bf16 %v410_v37 }
  0x18   :  { %491 = vmatprep.subr.bf16.mxu1 %v428_v42  ;;  %564 = vmatprep.subr.bf16.mxu0 %v430_v43  ;;  %v467_v42 = vunpack.c.l.s8.bf16 %v407_v40  ;;  %v469_v43 = vunpack.c.l.s8.bf16 %v409_v41 }
  0x1a   :  { %492 = vmatpush1.bf16.msra.mxu1 %v427_v46  ;;  %v471_v46 = vunpack.c.h.s8.bf16 %v407_v40 }
  0x1b   :  { %565 = vmatpush1.bf16.msra.mxu0 %v429_v47  ;;  %493 = vmatprep.subr.bf16.mxu1 %v432_v48  ;;  %v473_v47 = vunpack.c.h.s8.bf16 %v409_v41 }
  0x1c   :  { %566 = vmatprep.subr.bf16.mxu0 %v434_v49 }
  0x1e   :  { %2303 = vmatmul.mubr.msk.bf16.gmra.mrb[12].mxu0 %vm61_vm1, %v50_v15  ;;  %494 = vmatpush1.bf16.msra.mxu1 %v431_v50  ;;  %v454_v15 = vunpack.c.l.s8.bf16 %v402_v13 }
  0x1f   :  { %567 = vmatpush1.bf16.msra.mxu0 %v433_v51  ;;  %495 = vmatprep.subr.bf16.mxu1 %v436_v54 }
  0x20   :  { %568 = vmatprep.subr.bf16.mxu0 %v438_v55 }
  0x22   :  { %496 = vmatpush1.bf16.msra.mxu1 %v435_v58 }
  0x23   :  { %569 = vmatpush1.bf16.msra.mxu0 %v437_v59  ;;  %497 = vmatprep.subr.bf16.mxu1 %v440_v60 }
  0x24   :  { %570 = vmatprep.subr.bf16.mxu0 %v442_v61 }
  0x26   :  { %498 = vmatpush1.bf16.msra.mxu1 %v439_v62 }
  0x27   :  { %571 = vmatpush1.bf16.msra.mxu0 %v441_v63  ;;  %499 = vmatprep.subr.bf16.mxu1 %v444_v2 }
  0x28   :  { %572 = vmatprep.subr.bf16.mxu0 %v446_v3 }
  0x2a   :  { %500 = vmatpush1.bf16.msra.mxu1 %v443_v6 }
  0x2b   :  { %573 = vmatpush1.bf16.msra.mxu0 %v445_v7  ;;  %501 = vmatprep.subr.bf16.mxu1 %v448_v8 }
  0x2c   :  { %574 = vmatprep.subr.bf16.mxu0 %v450_v9 }
  0x2e   :  { %502 = vmatpush1.bf16.msra.mxu1 %v447_v10 }
  0x2f   :  { %575 = vmatpush1.bf16.msra.mxu0 %v449_v11  ;;  %503 = vmatprep.subr.bf16.mxu1 %v452_v14 }
  0x30   :  { %576 = vmatprep.subr.bf16.mxu0 %v454_v15 }
  0x32   :  { %504 = vmatpush1.bf16.msra.mxu1 %v451_v18 }
  0x33   :  { %577 = vmatpush1.bf16.msra.mxu0 %v453_v19  ;;  %505 = vmatprep.subr.bf16.mxu1 %v456_v20 }
  0x34   :  { %578 = vmatprep.subr.bf16.mxu0 %v458_v21 }
  0x36   :  { %506 = vmatpush1.bf16.msra.mxu1 %v455_v22 }
  0x37   :  { %579 = vmatpush1.bf16.msra.mxu0 %v457_v23  ;;  %507 = vmatprep.subr.bf16.mxu1 %v460_v26 }
  0x38   :  { %580 = vmatprep.subr.bf16.mxu0 %v462_v27 }
  0x3a   :  { %508 = vmatpush1.bf16.msra.mxu1 %v459_v30 }
  0x3b   :  { %581 = vmatpush1.bf16.msra.mxu0 %v461_v31  ;;  %509 = vmatprep.subr.bf16.mxu1 %v464_v32 }
  0x3c   :  { %582 = vmatprep.subr.bf16.mxu0 %v466_v33 }
  0x3e   :  { %510 = vmatpush1.bf16.msra.mxu1 %v463_v34 }
  0x3f   :  { %583 = vmatpush1.bf16.msra.mxu0 %v465_v35  ;;  %511 = vmatprep.subr.bf16.mxu1 %v468_v38 }
  0x40   :  { %584 = vmatprep.subr.bf16.mxu0 %v470_v39 }
  0x42   :  { %512 = vmatpush1.bf16.msra.mxu1 %v467_v42 }
  0x43   :  { %585 = vmatpush1.bf16.msra.mxu0 %v469_v43  ;;  %513 = vmatprep.subr.bf16.mxu1 %v472_v44 }
  0x44   :  { %586 = vmatprep.subr.bf16.mxu0 %v474_v45 }
  0x46   :  { %514 = vmatpush1.bf16.msra.mxu1 %v471_v46 }
  0x47   :  { %587 = vmatpush1.bf16.msra.mxu0 %v473_v47 }
  0xd9   :  { %v2641_v48 = vpop.f32.mrb[0].mxu0 }
  0xda   :  { %v2643_v49 = vpop.f32.mrb[1].mxu0  ;;  %v183_v51 = vmul.f32 %v2641_v48, %v2641_v48 }
  0xdb   :  { %v2645_v50 = vpop.f32.mrb[2].mxu0  ;;  %v184_v55 = vmul.f32 %v2643_v49, %v2643_v49 }
  0xdc   :  { %v154_v52 = vadd.f32 %v2645_v50, %v2641_v48  ;;  %v185_v53 = vmul.f32 %v2645_v50, %v2645_v50  ;;  %v2653_v54 = vpop.f32.mrb[3].mxu0 }
  0xdd   :  { %v167_v56 = vadd.f32 %v2653_v54, %v2643_v49  ;;  %v186_v57 = vmul.f32 %v2653_v54, %v2653_v54 }
  0xde   :  { %v199_v58 = vadd.f32 %v185_v53, %v183_v51 }
  0xdf   :  { %v212_v59 = vadd.f32 %v186_v57, %v184_v55 }
  0xe1   :  { %v2661_v60 = vpop.f32.mrb[4].mxu0 }
  0xe2   :  { %v155_v61 = vadd.f32 %v154_v52, %v2661_v60  ;;  %v187_v62 = vmul.f32 %v2661_v60, %v2661_v60  ;;  %v2666_v63 = vpop.f32.mrb[5].mxu0 }
  0xe3   :  { %v168_v0 = vadd.f32 %v167_v56, %v2666_v63  ;;  %v188_v1 = vmul.f32 %v2666_v63, %v2666_v63  ;;  %v2671_v2 = vpop.f32.mrb[6].mxu0 }
  0xe4   :  { %v200_v3 = vadd.f32 %v199_v58, %v187_v62  ;;  %v156_v4 = vadd.f32 %v155_v61, %v2671_v2  ;;  %v189_v5 = vmul.f32 %v2671_v2, %v2671_v2  ;;  %v2676_v6 = vpop.f32.mrb[7].mxu0 }
  0xe5   :  { %v213_v7 = vadd.f32 %v212_v59, %v188_v1  ;;  %v169_v8 = vadd.f32 %v168_v0, %v2676_v6  ;;  %v190_v9 = vmul.f32 %v2676_v6, %v2676_v6 }
  0xe6   :  { %v201_v10 = vadd.f32 %v200_v3, %v189_v5 }
  0xe7   :  { %v214_v11 = vadd.f32 %v213_v7, %v190_v9 }
  0xe9   :  { %v2681_v12 = vpop.f32.mrb[8].mxu0 }
  0xea   :  { %v157_v13 = vadd.f32 %v156_v4, %v2681_v12  ;;  %v191_v14 = vmul.f32 %v2681_v12, %v2681_v12  ;;  %v2686_v15 = vpop.f32.mrb[9].mxu0 }
  0xeb   :  { %v170_v16 = vadd.f32 %v169_v8, %v2686_v15  ;;  %v192_v17 = vmul.f32 %v2686_v15, %v2686_v15  ;;  %v2691_v18 = vpop.f32.mrb[10].mxu0 }
  0xec   :  { %v202_v19 = vadd.f32 %v201_v10, %v191_v14  ;;  %v158_v20 = vadd.f32 %v157_v13, %v2691_v18  ;;  %v193_v21 = vmul.f32 %v2691_v18, %v2691_v18  ;;  %v2696_v22 = vpop.f32.mrb[11].mxu0 }
  0xed   :  { %v215_v23 = vadd.f32 %v214_v11, %v192_v17  ;;  %v171_v24 = vadd.f32 %v170_v16, %v2696_v22  ;;  %v194_v25 = vmul.f32 %v2696_v22, %v2696_v22 }
  0xee   :  { %v203_v26 = vadd.f32 %v202_v19, %v193_v21 }
  0xef   :  { %v216_v27 = vadd.f32 %v215_v23, %v194_v25 }
  0xf1   :  { %v2701_v28 = vpop.f32.mrb[12].mxu0 }
  0xf2   :  { %v159_v29 = vadd.f32 %v158_v20, %v2701_v28  ;;  %v195_v30 = vmul.f32 %v2701_v28, %v2701_v28  ;;  %v2706_v31 = vpop.f32.mrb[13].mxu0 }
  0xf3   :  { %v172_v32 = vadd.f32 %v171_v24, %v2706_v31  ;;  %v196_v33 = vmul.f32 %v2706_v31, %v2706_v31  ;;  %v2711_v34 = vpop.f32.mrb[14].mxu0 }
  0xf4   :  { %v204_v35 = vadd.f32 %v203_v26, %v195_v30  ;;  %v160_v36 = vadd.f32 %v159_v29, %v2711_v34  ;;  %v197_v37 = vmul.f32 %v2711_v34, %v2711_v34  ;;  %v151_v38 = vpop.f32.mrb[15].mxu0  ;;  %v2477_v29 = vmov 1966171168  }
  0xf5   :  { %v217_v39 = vadd.f32 %v216_v27, %v196_v33  ;;  %v173_v40 = vadd.f32 %v172_v32, %v151_v38  ;;  %v198_v41 = vmul.f32 %v151_v38, %v151_v38  ;;  %v241_v30 = vunpack.c.l.s4 %v2477_v29 }
  0xf6   :  { %v161_v42 = vrot.slane %v160_v36, 4  ;;  %v205_v43 = vadd.f32 %v204_v35, %v197_v37  ;;  %v243_v32 = vlaneseq }
  0xf7   :  { %v174_v44 = vrot.slane %v173_v40, 4  ;;  %v218_v45 = vadd.f32 %v217_v39, %v198_v41  ;;  %v242_v33 = vunpack.c.0.s8 %v241_v30 }
  0xf8   :  { %v162_v46 = vadd.f32 %v161_v42, %v160_v36  ;;  %v206_v47 = vrot.slane %v205_v43, 4  ;;  %v2716_v35 = vshrl.u32 %v243_v32, 7  ;;  %v22_v42 = vld [vmem:[%s3921_s4] ss:$8 sm:$0x3] }
  0xf9   :  { %v175_v51 = vadd.f32 %v174_v44, %v173_v40  ;;  %v219_v52 = vrot.slane %v218_v45, 4 }
  0xfa   :  { %v163_v53 = vrot.slane %v162_v46, 2  ;;  %v207_v55 = vadd.f32 %v206_v47, %v205_v43  ;;  %3945 = vst [vmem:[#allocation5_spill] sm:$0xff] %v2716_v35  ;;  %v2719_v37 = vsub.s32 %v242_v33, %v2716_v35  ;;  %v2727_v44 = vsub.s32 0, %v2716_v35 }
  0xfb   :  { %v176_v56 = vrot.slane %v175_v51, 2  ;;  %v220_v57 = vadd.f32 %v219_v52, %v218_v45  ;;  %v2730_v45 = vsub.s32 1, %v2716_v35 }
  0xfc   :  { %v164_v58 = vadd.f32 %v163_v53, %v162_v46  ;;  %v208_v59 = vrot.slane %v207_v55, 2  ;;  %3946 = vst [vmem:[#allocation6_spill] sm:$0xff] %v2727_v44 }
  0xfd   :  { %v177_v61 = vadd.f32 %v176_v56, %v175_v51  ;;  %v221_v62 = vrot.slane %v220_v57, 2  ;;  %3947 = vst [vmem:[#allocation7_spill] sm:$0xff] %v2730_v45 }
  0xfe   :  { %v165_v0 = vrot.slane %v164_v58, 1  ;;  %v209_v1 = vadd.f32 %v208_v59, %v207_v55 }
  0xff   :  { %v178_v3 = vrot.slane %v177_v61, 1  ;;  %v222_v4 = vadd.f32 %v221_v62, %v220_v57 }
 0x100   :  { %v166_v5 = vadd.f32 %v165_v0, %v164_v58  ;;  %v210_v7 = vrot.slane %v209_v1, 1 }
 0x101   :  { %v179_v8 = vadd.f32 %v178_v3, %v177_v61  ;;  %v223_v9 = vrot.slane %v222_v4, 1 }
 0x102   :  { %v181_v10 = vmul.f32 0.015625, %v166_v5  ;;  %v211_v11 = vadd.f32 %v210_v7, %v209_v1 }
 0x103   :  { %v182_v13 = vmul.f32 0.015625, %v179_v8  ;;  %v224_v14 = vadd.f32 %v223_v9, %v222_v4 }
 0x104   :  { %v225_v16 = vmul.f32 0.015625, %v211_v11  ;;  %v227_v17 = vmul.f32 %v181_v10, %v181_v10 }
 0x105   :  { %v226_v19 = vmul.f32 0.015625, %v224_v14  ;;  %v228_v20 = vmul.f32 %v182_v13, %v182_v13 }
 0x106   :  { %v229_v21 = vsub.f32 %v225_v16, %v227_v17 }
 0x107   :  { %v230_v23 = vsub.f32 %v226_v19, %v228_v20 }
 0x108   :  { %v231_v24 = vmax.f32 %v229_v21, 0.0 }
 0x109   :  { %v232_v25 = vmax.f32 %v230_v23, 0.0 }
 0x10a   :  { %v233_v26 = vadd.f32 1e-05, %v231_v24 }
 0x10b   :  { %v234_v27 = vadd.f32 1e-05, %v232_v25 }
 0x10c   :  { %2440 = vrsqrt.f32 %v233_v26 }
 0x10d   :  { %2442 = vrsqrt.f32 %v234_v27 }
 0x116   :  { %v2441_v36 = vpop.eup %2440 }
 0x117   :  { %v2443_v39 = vpop.eup %2442 }
 0x118   :  { %v239_v40 = vcombine.low %v2441_v36, %v2443_v39 }
 0x11a   :  { %v246_v41 = vrot.slane %v239_v40, %v2719_v37 }
 0x11c   :  { %v253_v43 = vrot.slane %v246_v41, %v2719_v37 }
 0x11e   :  { %v255_v46 = vmul.f32 %v253_v43, %v22_v42 }
 0x120   :  { %v260_v47 = vrot.slane %v255_v46, %v2727_v44  ;;  %v264_v51 = vrot.slane %v255_v46, %v2730_v45 }
 0x122   :  { %v282_v52 = vmul.f32 %v264_v51, %v151_v38  ;;  %v283_v53 = vmul.f32 %v260_v47, %v181_v10  ;;  %v284_v55 = vmul.f32 %v264_v51, %v182_v13  ;;  %v268_v56 = vmul.f32 %v264_v51, %v2643_v49 }
 0x123   :  { %v270_v57 = vmul.f32 %v264_v51, %v2653_v54  ;;  %v267_v58 = vmul.f32 %v260_v47, %v2641_v48  ;;  %v269_v59 = vmul.f32 %v260_v47, %v2645_v50  ;;  %v272_v61 = vmul.f32 %v264_v51, %v2666_v63 }
 0x124   :  { %v287_v62 = vcombine.low %v283_v53, %v284_v55  ;;  %v274_v0 = vmul.f32 %v264_v51, %v2676_v6  ;;  %v271_v1 = vmul.f32 %v260_v47, %v2661_v60  ;;  %v273_v3 = vmul.f32 %v260_v47, %v2671_v2  ;;  %v2289_v60 = vld [vmem:[%s3921_s4 + $0x1] ss:$8 sm:$0x3] }
 0x125   :  { %v276_v38 = vmul.f32 %v264_v51, %v2686_v15  ;;  %v278_v4 = vmul.f32 %v264_v51, %v2696_v22  ;;  %v275_v49 = vmul.f32 %v260_v47, %v2681_v12  ;;  %v277_v54 = vmul.f32 %v260_v47, %v2691_v18 }
 0x126   :  { %v294_v48 = vrot.slane %v287_v62, %v2719_v37  ;;  %v280_v50 = vmul.f32 %v264_v51, %v2706_v31  ;;  %v2749_v63 = vmul.f32 %v260_v47, %v2701_v28  ;;  %v2752_v6 = vmul.f32 %v260_v47, %v2711_v34 }
 0x128   :  { %v301_v2 = vrot.slane %v294_v48, %v2719_v37 }
 0x12a   :  { %v303_v15 = vsub.f32 %v2289_v60, %v301_v2 }
 0x12c   :  { %v2759_v12 = vrot.slane %v303_v15, %v2727_v44  ;;  %v312_v18 = vrot.slane %v303_v15, %v2730_v45 }
 0x12e   :  { %v2762_v22 = vadd.f32 %v312_v18, %v282_v52  ;;  %v316_v31 = vadd.f32 %v312_v18, %v268_v56  ;;  %v318_v28 = vadd.f32 %v312_v18, %v270_v57  ;;  %v315_v5 = vadd.f32 %v2759_v12, %v267_v58 }
 0x12f   :  { %v317_v34 = vadd.f32 %v2759_v12, %v269_v59  ;;  %v320_v7 = vadd.f32 %v312_v18, %v272_v61  ;;  %v322_v8 = vadd.f32 %v312_v18, %v274_v0  ;;  %v319_v9 = vadd.f32 %v2759_v12, %v271_v1 }
 0x130   :  { %vm332_vm2 = vcmp.ge.f32.partialorder %v316_v31, 0.0  ;;  %vm334_vm3 = vcmp.ge.f32.partialorder %v318_v28, 0.0  ;;  %v348_v10 = vmul.f32 0.01, %v316_v31  ;;  %v350_v11 = vmul.f32 0.01, %v318_v28 }
 0x131   :  { %vm331_vm4 = vcmp.ge.f32.partialorder %v315_v5, 0.0  ;;  %vm333_vm5 = vcmp.ge.f32.partialorder %v317_v34, 0.0  ;;  %v347_v13 = vmul.f32 0.01, %v315_v5  ;;  %v349_v14 = vmul.f32 0.01, %v317_v34 }
 0x132   :  { %v364_v16 = vsel %vm332_vm2, %v316_v31, %v348_v10  ;;  %v366_v17 = vsel %vm334_vm3, %v318_v28, %v350_v11  ;;  %vm336_vm6 = vcmp.ge.f32.partialorder %v320_v7, 0.0  ;;  %vm338_vm7 = vcmp.ge.f32.partialorder %v322_v8, 0.0  ;;  %v1114_v31 = vld [vmem:[%s3920_s3 + $0x10] sm:$0xff]  ;;  %v1120_v10 = vld [vmem:[%s3920_s3 + $0x40] sm:$0xff] }
 0x133   :  { %v476_v19 = vpack.c.bf16 %v366_v17, %v364_v16  ;;  %v363_v20 = vsel %vm331_vm4, %v315_v5, %v347_v13  ;;  %v365_v21 = vsel %vm333_vm5, %v317_v34, %v349_v14  ;;  %v352_v23 = vmul.f32 0.01, %v320_v7  ;;  %v1122_v11 = vld [vmem:[%s3920_s3 + $0x50] sm:$0xff]  ;;  %v1119_v16 = vld [vmem:[%s3920_s3 + $0x38] sm:$0xff]  ;;  %v1121_v17 = vld [vmem:[%s3920_s3 + $0x48] sm:$0xff] }
 0x134   :  { %v475_v24 = vpack.c.bf16 %v365_v21, %v363_v20  ;;  %v354_v25 = vmul.f32 0.01, %v322_v8  ;;  %v321_v26 = vadd.f32 %v2759_v12, %v273_v3  ;;  %vm335_vm8 = vcmp.ge.f32.partialorder %v319_v9, 0.0 }
 0x135   :  { %515 = vmatprep.mubr.bf16.mxu1 %v476_v19  ;;  %588 = vmatprep.mubr.bf16.mxu0 %v476_v19  ;;  %v368_v27 = vsel %vm336_vm6, %v320_v7, %v352_v23  ;;  %v351_v29 = vmul.f32 0.01, %v319_v9  ;;  %v324_v30 = vadd.f32 %v312_v18, %v276_v38  ;;  %v326_v32 = vadd.f32 %v312_v18, %v278_v4 }
 0x136   :  { %516 = vmatmul.mubr.bf16.vlgmr.msra.gmra.mrb[0].mxu1 %v475_v24  ;;  %589 = vmatmul.mubr.bf16.vlgmr.msra.gmra.mrb[16].mxu0 %v475_v24  ;;  %v370_v33 = vsel %vm338_vm7, %v322_v8, %v354_v25  ;;  %vm337_vm9 = vcmp.ge.f32.partialorder %v321_v26, 0.0  ;;  %v353_v36 = vmul.f32 0.01, %v321_v26  ;;  %v323_v39 = vadd.f32 %v2759_v12, %v275_v49 }
 0x137   :  { %v478_v40 = vpack.c.bf16 %v370_v33, %v368_v27  ;;  %v367_v41 = vsel %vm335_vm8, %v319_v9, %v351_v29  ;;  %vm340_vm10 = vcmp.ge.f32.partialorder %v324_v30, 0.0  ;;  %vm342_vm11 = vcmp.ge.f32.partialorder %v326_v32, 0.0  ;;  %v1129_v27 = vld [vmem:[%s3920_s3 + $0x88] sm:$0xff]  ;;  %v1128_v33 = vld [vmem:[%s3920_s3 + $0x80] sm:$0xff] }
 0x138   :  { %v369_v42 = vsel %vm337_vm9, %v321_v26, %v353_v36  ;;  %v356_v43 = vmul.f32 0.01, %v324_v30  ;;  %v358_v46 = vmul.f32 0.01, %v326_v32  ;;  %v325_v47 = vadd.f32 %v2759_v12, %v277_v54  ;;  %v1127_v26 = vld [vmem:[%s3920_s3 + $0x78] sm:$0xff] }
 0x139   :  { %525 = vmatprep.mubr.bf16.mxu1 %v478_v40  ;;  %598 = vmatprep.mubr.bf16.mxu0 %v478_v40  ;;  %v477_v51 = vpack.c.bf16 %v369_v42, %v367_v41  ;;  %vm339_vm12 = vcmp.ge.f32.partialorder %v323_v39, 0.0  ;;  %v355_v52 = vmul.f32 0.01, %v323_v39  ;;  %v328_v53 = vadd.f32 %v312_v18, %v280_v50 }
 0x13a   :  { %v372_v55 = vsel %vm340_vm10, %v324_v30, %v356_v43  ;;  %v374_v56 = vsel %vm342_vm11, %v326_v32, %v358_v46  ;;  %vm341_vm13 = vcmp.ge.f32.partialorder %v325_v47, 0.0  ;;  %v357_v57 = vmul.f32 0.01, %v325_v47  ;;  %v1126_v32 = vld [vmem:[%s3920_s3 + $0x70] sm:$0xff] }
 0x13b   :  { %v480_v58 = vpack.c.bf16 %v374_v56, %v372_v55  ;;  %v371_v59 = vsel %vm339_vm12, %v323_v39, %v355_v52  ;;  %vm344_vm14 = vcmp.ge.f32.partialorder %v328_v53, 0.0  ;;  %vm346_vm15 = vcmp.ge.f32.partialorder %v2762_v22, 0.0  ;;  %v1134_v46 = vld [vmem:[%s3920_s3 + $0xb0] sm:$0xff]  ;;  %v1135_v56 = vld [vmem:[%s3920_s3 + $0xb8] sm:$0xff] }
 0x13c   :  { %v373_v61 = vsel %vm341_vm13, %v325_v47, %v357_v57  ;;  %v360_v62 = vmul.f32 0.01, %v328_v53  ;;  %v362_v0 = vmul.f32 0.01, %v2762_v22  ;;  %v327_v1 = vadd.f32 %v2759_v12, %v2749_v63  ;;  %v1113_v63 = vld [vmem:[%s3920_s3 + $0x8] sm:$0xff]  ;;  %v1136_v47 = vld [vmem:[%s3920_s3 + $0xc0] sm:$0xff] }
 0x13d   :  { %v479_v3 = vpack.c.bf16 %v373_v61, %v371_v59  ;;  %v329_v38 = vadd.f32 %v2759_v12, %v2752_v6  ;;  %v1115_v6 = vld [vmem:[%s3920_s3 + $0x18] sm:$0xff]  ;;  %v1225_v12 = vunpack.c.l.s8.bf16 %v1113_v63  ;;  %v1226_v5 = vunpack.c.l.s8.bf16 %v1114_v31 }
 0x13e   :  { %526 = vmatmul.mubr.bf16.gmra.mrb[4].mxu1 %v477_v51  ;;  %599 = vmatmul.mubr.bf16.gmra.mrb[20].mxu0 %v477_v51  ;;  %v376_v4 = vsel %vm344_vm14, %v328_v53, %v360_v62  ;;  %v378_v49 = vsel %vm346_vm15, %v2762_v22, %v362_v0  ;;  %vm343_vm0 = vcmp.ge.f32.partialorder %v327_v1, 0.0  ;;  %v359_v54 = vmul.f32 0.01, %v327_v1  ;;  %v1112_v22 = vld [vmem:[%s3920_s3] sm:$0xff]  ;;  %v1133_v51 = vld [vmem:[%s3920_s3 + $0xa8] sm:$0xff] }
 0x13f   :  { %535 = vmatprep.mubr.bf16.mxu1 %v480_v58  ;;  %608 = vmatprep.mubr.bf16.mxu0 %v480_v58  ;;  %v482_v48 = vpack.c.bf16 %v378_v49, %v376_v4  ;;  %vm345_vm1 = vcmp.ge.f32.partialorder %v329_v38, 0.0  ;;  %v361_v50 = vmul.f32 0.01, %v329_v38  ;;  %v1227_v18 = vunpack.c.l.s8.bf16 %v1115_v6  ;;  %v1141_v0 = vld [vmem:[%s3920_s3 + $0xe8] sm:$0xff]  ;;  %v1140_v4 = vld [vmem:[%s3920_s3 + $0xe0] sm:$0xff]  ;;  %v1142_v49 = vld [vmem:[%s3920_s3 + $0xf0] sm:$0xff] }
 0x140   :  { %v375_v60 = vsel %vm343_vm0, %v327_v1, %v359_v54  ;;  %v1224_v28 = vunpack.c.l.s8.bf16 %v1112_v22  ;;  %1464 = vmatprep.subr.bf16.mxu1 %v1225_v12  ;;  %v1232_v34 = vunpack.c.h.s8.bf16 %v1113_v63  ;;  %v1234_v7 = vunpack.c.h.s8.bf16 %v1115_v6  ;;  %v1143_v1 = vld [vmem:[%s3920_s3 + $0xf8] sm:$0xff]  ;;  %v1148_v63 = vld [vmem:[%s3920_s3 + $0x120] sm:$0xff]  ;;  %v1150_v6 = vld [vmem:[%s3920_s3 + $0x130] sm:$0xff] }
 0x141   :  { %v377_v2 = vsel %vm345_vm1, %v329_v38, %v361_v50  ;;  %1610 = vmatprep.subr.bf16.mxu0 %v1227_v18  ;;  %v1231_v8 = vunpack.c.h.s8.bf16 %v1112_v22  ;;  %v1233_v9 = vunpack.c.h.s8.bf16 %v1114_v31  ;;  %v1239_v13 = vunpack.c.l.s8.bf16 %v1120_v10  ;;  %v1147_v22 = vld [vmem:[%s3920_s3 + $0x118] sm:$0xff]  ;;  %v1149_v31 = vld [vmem:[%s3920_s3 + $0x128] sm:$0xff] }
 0x142   :  { %v481_v15 = vpack.c.bf16 %v377_v2, %v375_v60  ;;  %1465 = vmatpush1.bf16.msra.mxu1 %v1224_v28  ;;  %1611 = vmatpush1.bf16.msra.mxu0 %v1226_v5  ;;  %v1241_v14 = vunpack.c.l.s8.bf16 %v1122_v11  ;;  %v1238_v19 = vunpack.c.l.s8.bf16 %v1119_v16  ;;  %v1240_v20 = vunpack.c.l.s8.bf16 %v1121_v17 }
 0x143   :  { %1466 = vmatprep.subr.bf16.mxu1 %v1232_v34  ;;  %1612 = vmatprep.subr.bf16.mxu0 %v1234_v7  ;;  %v1246_v21 = vunpack.c.h.s8.bf16 %v1120_v10  ;;  %v1248_v23 = vunpack.c.h.s8.bf16 %v1122_v11  ;;  %v1245_v24 = vunpack.c.h.s8.bf16 %v1119_v16  ;;  %v1247_v25 = vunpack.c.h.s8.bf16 %v1121_v17  ;;  %v1155_v10 = vld [vmem:[%s3920_s3 + $0x158] sm:$0xff]  ;;  %v1157_v11 = vld [vmem:[%s3920_s3 + $0x168] sm:$0xff]  ;;  %v1154_v16 = vld [vmem:[%s3920_s3 + $0x150] sm:$0xff] }
 0x144   :  { %v1253_v29 = vunpack.c.l.s8.bf16 %v1127_v26  ;;  %v1255_v30 = vunpack.c.l.s8.bf16 %v1129_v27  ;;  %v1252_v36 = vunpack.c.l.s8.bf16 %v1126_v32  ;;  %v1254_v39 = vunpack.c.l.s8.bf16 %v1128_v33  ;;  %v1156_v17 = vld [vmem:[%s3920_s3 + $0x160] sm:$0xff] }
 0x145   :  { %v1260_v40 = vunpack.c.h.s8.bf16 %v1127_v26  ;;  %v1262_v41 = vunpack.c.h.s8.bf16 %v1129_v27  ;;  %v1259_v42 = vunpack.c.h.s8.bf16 %v1126_v32  ;;  %v1261_v43 = vunpack.c.h.s8.bf16 %v1128_v33  ;;  %v1161_v32 = vld [vmem:[%s3920_s3 + $0x188] sm:$0xff]  ;;  %v1163_v33 = vld [vmem:[%s3920_s3 + $0x198] sm:$0xff] }
 0x146   :  { %536 = vmatmul.mubr.bf16.gmra.mrb[8].mxu1 %v479_v3  ;;  %609 = vmatmul.mubr.bf16.gmra.mrb[24].mxu0 %v479_v3  ;;  %v1267_v52 = vunpack.c.l.s8.bf16 %v1134_v46  ;;  %v1269_v53 = vunpack.c.l.s8.bf16 %v1136_v47  ;;  %v1266_v55 = vunpack.c.l.s8.bf16 %v1133_v51  ;;  %v1268_v57 = vunpack.c.l.s8.bf16 %v1135_v56 }
 0x147   :  { %545 = vmatprep.mubr.bf16.mxu1 %v482_v48  ;;  %618 = vmatprep.mubr.bf16.mxu0 %v482_v48  ;;  %v1274_v58 = vunpack.c.h.s8.bf16 %v1134_v46  ;;  %v1276_v59 = vunpack.c.h.s8.bf16 %v1136_v47  ;;  %v1273_v61 = vunpack.c.h.s8.bf16 %v1133_v51  ;;  %v1275_v62 = vunpack.c.h.s8.bf16 %v1135_v56 }
 0x148   :  { %1467 = vmatpush1.bf16.msra.mxu1 %v1231_v8  ;;  %1613 = vmatpush1.bf16.msra.mxu0 %v1233_v9  ;;  %v1281_v3 = vunpack.c.l.s8.bf16 %v1141_v0  ;;  %v1283_v38 = vunpack.c.l.s8.bf16 %v1143_v1  ;;  %v1280_v54 = vunpack.c.l.s8.bf16 %v1140_v4  ;;  %v1282_v48 = vunpack.c.l.s8.bf16 %v1142_v49 }
 0x149   :  { %1468 = vmatprep.subr.bf16.mxu1 %v1239_v13  ;;  %1614 = vmatprep.subr.bf16.mxu0 %v1241_v14  ;;  %v1288_v50 = vunpack.c.h.s8.bf16 %v1141_v0  ;;  %v1290_v60 = vunpack.c.h.s8.bf16 %v1143_v1  ;;  %v1287_v2 = vunpack.c.h.s8.bf16 %v1140_v4  ;;  %v1295_v12 = vunpack.c.l.s8.bf16 %v1148_v63 }
 0x14a   :  { %v1297_v18 = vunpack.c.l.s8.bf16 %v1150_v6  ;;  %v1294_v28 = vunpack.c.l.s8.bf16 %v1147_v22  ;;  %v1296_v5 = vunpack.c.l.s8.bf16 %v1149_v31  ;;  %v1302_v34 = vunpack.c.h.s8.bf16 %v1148_v63 }
 0x14b   :  { %v1304_v7 = vunpack.c.h.s8.bf16 %v1150_v6  ;;  %v1301_v8 = vunpack.c.h.s8.bf16 %v1147_v22  ;;  %v1303_v9 = vunpack.c.h.s8.bf16 %v1149_v31  ;;  %v1309_v13 = vunpack.c.l.s8.bf16 %v1155_v10 }
 0x14c   :  { %1469 = vmatpush1.bf16.msra.mxu1 %v1238_v19  ;;  %1615 = vmatpush1.bf16.msra.mxu0 %v1240_v20  ;;  %v1311_v14 = vunpack.c.l.s8.bf16 %v1157_v11  ;;  %v1308_v19 = vunpack.c.l.s8.bf16 %v1154_v16  ;;  %v1310_v20 = vunpack.c.l.s8.bf16 %v1156_v17  ;;  %v1315_v26 = vunpack.c.h.s8.bf16 %v1154_v16 }
 0x14d   :  { %1470 = vmatprep.subr.bf16.mxu1 %v1246_v21  ;;  %1616 = vmatprep.subr.bf16.mxu0 %v1248_v23  ;;  %v1316_v21 = vunpack.c.h.s8.bf16 %v1155_v10  ;;  %v1318_v23 = vunpack.c.h.s8.bf16 %v1157_v11  ;;  %v1317_v27 = vunpack.c.h.s8.bf16 %v1156_v17  ;;  %v1329_v46 = vunpack.c.h.s8.bf16 %v1161_v32 }
 0x14e   :  { %546 = vmatmul.mubr.bf16.gmra.mrb[12].mxu1 %v481_v15  ;;  %619 = vmatmul.mubr.bf16.gmra.mrb[28].mxu0 %v481_v15  ;;  %v1289_v15 = vunpack.c.h.s8.bf16 %v1142_v49  ;;  %v1331_v47 = vunpack.c.h.s8.bf16 %v1163_v33  ;;  %v2893_v56 = vsub.s32 3, %v2716_v35 }
 0x150   :  { %1471 = vmatpush1.bf16.msra.mxu1 %v1245_v24  ;;  %1617 = vmatpush1.bf16.msra.mxu0 %v1247_v25  ;;  %v1162_v24 = vld [vmem:[%s3920_s3 + $0x190] sm:$0xff]  ;;  %v1164_v25 = vld [vmem:[%s3920_s3 + $0x1a0] sm:$0xff]  ;;  %3949 = vst [vmem:[#allocation9_spill] sm:$0xff] %v2893_v56 }
 0x151   :  { %1472 = vmatprep.subr.bf16.mxu1 %v1253_v29  ;;  %1618 = vmatprep.subr.bf16.mxu0 %v1255_v30  ;;  %v1323_v29 = vunpack.c.l.s8.bf16 %v1162_v24  ;;  %v1325_v30 = vunpack.c.l.s8.bf16 %v1164_v25 }
 0x154   :  { %1473 = vmatpush1.bf16.msra.mxu1 %v1252_v36  ;;  %1619 = vmatpush1.bf16.msra.mxu0 %v1254_v39  ;;  %v1322_v36 = vunpack.c.l.s8.bf16 %v1161_v32  ;;  %v1324_v39 = vunpack.c.l.s8.bf16 %v1163_v33 }
 0x155   :  { %1474 = vmatprep.subr.bf16.mxu1 %v1260_v40  ;;  %1620 = vmatprep.subr.bf16.mxu0 %v1262_v41  ;;  %v1330_v40 = vunpack.c.h.s8.bf16 %v1162_v24  ;;  %v1332_v41 = vunpack.c.h.s8.bf16 %v1164_v25 }
 0x158   :  { %1475 = vmatpush1.bf16.msra.mxu1 %v1259_v42  ;;  %1621 = vmatpush1.bf16.msra.mxu0 %v1261_v43  ;;  %v2877_v42 = vld [vmem:[%s3920_s3 + $0x1c8] sm:$0xff]  ;;  %v2882_v43 = vld [vmem:[%s3920_s3 + $0x1d8] sm:$0xff] }
 0x159   :  { %1476 = vmatprep.subr.bf16.mxu1 %v1267_v52  ;;  %1622 = vmatprep.subr.bf16.mxu0 %v1269_v53  ;;  %v1337_v51 = vunpack.c.l.s8.bf16 %v2877_v42  ;;  %v1339_v52 = vunpack.c.l.s8.bf16 %v2882_v43  ;;  %v2887_v53 = vsub.s32 2, %v2716_v35 }
 0x15b   :  { %3948 = vst [vmem:[#allocation8_spill] sm:$0xff] %v2887_v53 }
 0x15c   :  { %1477 = vmatpush1.bf16.msra.mxu1 %v1266_v55  ;;  %1623 = vmatpush1.bf16.msra.mxu0 %v1268_v57  ;;  %v2292_v55 = vld [vmem:[%s3921_s4 + $0x5] ss:$8 sm:$0xf] }
 0x15d   :  { %1478 = vmatprep.subr.bf16.mxu1 %v1274_v58  ;;  %1624 = vmatprep.subr.bf16.mxu0 %v1276_v59  ;;  %v2896_v57 = vrot.slane %v2292_v55, %v2727_v44  ;;  %v2899_v58 = vrot.slane %v2292_v55, %v2887_v53  ;;  %v2902_v59 = vrot.slane %v2292_v55, %v2730_v45 }
 0x160   :  { %1479 = vmatpush1.bf16.msra.mxu1 %v1273_v61  ;;  %1625 = vmatpush1.bf16.msra.mxu0 %v1275_v62  ;;  %v2905_v61 = vrot.slane %v2292_v55, %v2893_v56 }
 0x161   :  { %1480 = vmatprep.subr.bf16.mxu1 %v1281_v3  ;;  %1626 = vmatprep.subr.bf16.mxu0 %v1283_v38 }
 0x164   :  { %1481 = vmatpush1.bf16.msra.mxu1 %v1280_v54  ;;  %1627 = vmatpush1.bf16.msra.mxu0 %v1282_v48 }
 0x165   :  { %1482 = vmatprep.subr.bf16.mxu1 %v1288_v50  ;;  %1628 = vmatprep.subr.bf16.mxu0 %v1290_v60 }
 0x168   :  { %1483 = vmatpush1.bf16.msra.mxu1 %v1287_v2  ;;  %1629 = vmatpush1.bf16.msra.mxu0 %v1289_v15 }
 0x169   :  { %1484 = vmatprep.subr.bf16.mxu1 %v1295_v12  ;;  %1630 = vmatprep.subr.bf16.mxu0 %v1297_v18 }
 0x16c   :  { %1485 = vmatpush1.bf16.msra.mxu1 %v1294_v28  ;;  %1631 = vmatpush1.bf16.msra.mxu0 %v1296_v5 }
 0x16d   :  { %1486 = vmatprep.subr.bf16.mxu1 %v1302_v34  ;;  %1632 = vmatprep.subr.bf16.mxu0 %v1304_v7 }
 0x170   :  { %1487 = vmatpush1.bf16.msra.mxu1 %v1301_v8  ;;  %1633 = vmatpush1.bf16.msra.mxu0 %v1303_v9 }
 0x171   :  { %1488 = vmatprep.subr.bf16.mxu1 %v1309_v13  ;;  %1634 = vmatprep.subr.bf16.mxu0 %v1311_v14 }
 0x174   :  { %1489 = vmatpush1.bf16.msra.mxu1 %v1308_v19  ;;  %1635 = vmatpush1.bf16.msra.mxu0 %v1310_v20 }
 0x175   :  { %1490 = vmatprep.subr.bf16.mxu1 %v1316_v21  ;;  %1636 = vmatprep.subr.bf16.mxu0 %v1318_v23 }
 0x178   :  { %1491 = vmatpush1.bf16.msra.mxu1 %v1315_v26  ;;  %1637 = vmatpush1.bf16.msra.mxu0 %v1317_v27 }
 0x179   :  { %1492 = vmatprep.subr.bf16.mxu1 %v1323_v29  ;;  %1638 = vmatprep.subr.bf16.mxu0 %v1325_v30 }
 0x17c   :  { %1493 = vmatpush1.bf16.msra.mxu1 %v1322_v36  ;;  %1639 = vmatpush1.bf16.msra.mxu0 %v1324_v39 }
 0x17d   :  { %1494 = vmatprep.subr.bf16.mxu1 %v1330_v40  ;;  %1640 = vmatprep.subr.bf16.mxu0 %v1332_v41 }
 0x180   :  { %1495 = vmatpush1.bf16.msra.mxu1 %v1329_v46  ;;  %1641 = vmatpush1.bf16.msra.mxu0 %v1331_v47 }
 0x181   :  { %1537 = vmatprep.subr.bf16.mxu1 %v1337_v51  ;;  %1683 = vmatprep.subr.bf16.mxu0 %v1339_v52 }
 0x209   :  { %v517_v62 = vpop.f32.mrb[0].mxu1  ;;  %v590_v0 = vpop.f32.mrb[16].mxu0 }
 0x20a   :  { %v519_v1 = vpop.f32.mrb[1].mxu1  ;;  %v592_v3 = vpop.f32.mrb[17].mxu0  ;;  %v2908_v38 = vmul.f32 %v2896_v57, %v517_v62  ;;  %v2911_v4 = vmul.f32 %v2899_v58, %v590_v0 }
 0x20b   :  { %v521_v49 = vpop.f32.mrb[2].mxu1  ;;  %v594_v54 = vpop.f32.mrb[18].mxu0  ;;  %v2914_v48 = vmul.f32 %v2902_v59, %v519_v1  ;;  %v2917_v50 = vmul.f32 %v2905_v61, %v592_v3 }
 0x20c   :  { %v2920_v60 = vmul.f32 %v2896_v57, %v521_v49  ;;  %v2923_v2 = vmul.f32 %v2899_v58, %v594_v54  ;;  %v523_v15 = vpop.f32.mrb[3].mxu1  ;;  %v596_v63 = vpop.f32.mrb[19].mxu0  ;;  %v738_v5 = vmul.f32 %v2908_v38, %v2908_v38  ;;  %v740_v34 = vmul.f32 %v2911_v4, %v2911_v4 }
 0x20d   :  { %v2926_v6 = vmul.f32 %v2902_v59, %v523_v15  ;;  %v2929_v12 = vmul.f32 %v2905_v61, %v596_v63  ;;  %v739_v7 = vmul.f32 %v2914_v48, %v2914_v48  ;;  %v741_v8 = vmul.f32 %v2917_v50, %v2917_v50 }
 0x20e   :  { %v742_v18 = vmul.f32 %v2920_v60, %v2920_v60  ;;  %v744_v22 = vmul.f32 %v2923_v2, %v2923_v2  ;;  %v682_v9 = vadd.f32 %v2920_v60, %v2908_v38  ;;  %v708_v10 = vadd.f32 %v2923_v2, %v2911_v4 }
 0x20f   :  { %v743_v31 = vmul.f32 %v2926_v6, %v2926_v6  ;;  %v745_v28 = vmul.f32 %v2929_v12, %v2929_v12  ;;  %v695_v11 = vadd.f32 %v2926_v6, %v2914_v48  ;;  %v721_v13 = vadd.f32 %v2929_v12, %v2917_v50 }
 0x210   :  { %v770_v17 = vadd.f32 %v742_v18, %v738_v5  ;;  %v796_v19 = vadd.f32 %v744_v22, %v740_v34 }
 0x211   :  { %v527_v14 = vpop.f32.mrb[4].mxu1  ;;  %v600_v16 = vpop.f32.mrb[20].mxu0  ;;  %v783_v25 = vadd.f32 %v743_v31, %v739_v7  ;;  %v809_v26 = vadd.f32 %v745_v28, %v741_v8 }
 0x212   :  { %v2956_v20 = vmul.f32 %v2896_v57, %v527_v14  ;;  %v2959_v21 = vmul.f32 %v2899_v58, %v600_v16  ;;  %v529_v23 = vpop.f32.mrb[5].mxu1  ;;  %v602_v24 = vpop.f32.mrb[21].mxu0 }
 0x213   :  { %v2962_v27 = vmul.f32 %v2902_v59, %v529_v23  ;;  %v2965_v29 = vmul.f32 %v2905_v61, %v602_v24  ;;  %v531_v30 = vpop.f32.mrb[6].mxu1  ;;  %v604_v32 = vpop.f32.mrb[22].mxu0 }
 0x214   :  { %3950 = vst [vmem:[#allocation10_spill] sm:$0xff] %v2959_v21  ;;  %v683_v33 = vadd.f32 %v682_v9, %v2956_v20  ;;  %v746_v36 = vmul.f32 %v2956_v20, %v2956_v20  ;;  %v709_v39 = vadd.f32 %v708_v10, %v2959_v21  ;;  %v748_v40 = vmul.f32 %v2959_v21, %v2959_v21  ;;  %v533_v41 = vpop.f32.mrb[7].mxu1  ;;  %v606_v46 = vpop.f32.mrb[23].mxu0 }
 0x215   :  { %3951 = vst [vmem:[#allocation11_spill] sm:$0xff] %v2965_v29  ;;  %v696_v47 = vadd.f32 %v695_v11, %v2962_v27  ;;  %v747_v51 = vmul.f32 %v2962_v27, %v2962_v27  ;;  %v722_v52 = vadd.f32 %v721_v13, %v2965_v29  ;;  %v749_v55 = vmul.f32 %v2965_v29, %v2965_v29 }
 0x216   :  { %v771_v62 = vadd.f32 %v770_v17, %v746_v36  ;;  %v797_v0 = vadd.f32 %v796_v19, %v748_v40  ;;  %v2980_v1 = vmul.f32 %v2896_v57, %v531_v30  ;;  %v2983_v3 = vmul.f32 %v2899_v58, %v604_v32 }
 0x217   :  { %v784_v49 = vadd.f32 %v783_v25, %v747_v51  ;;  %v810_v54 = vadd.f32 %v809_v26, %v749_v55  ;;  %v2986_v15 = vmul.f32 %v2902_v59, %v533_v41  ;;  %v2989_v63 = vmul.f32 %v2905_v61, %v606_v46 }
 0x218   :  { %3952 = vst [vmem:[#allocation12_spill] sm:$0xff] %v2983_v3  ;;  %v684_v18 = vadd.f32 %v683_v33, %v2980_v1  ;;  %v750_v22 = vmul.f32 %v2980_v1, %v2980_v1  ;;  %v710_v31 = vadd.f32 %v709_v39, %v2983_v3  ;;  %v752_v28 = vmul.f32 %v2983_v3, %v2983_v3 }
 0x219   :  { %3953 = vst [vmem:[#allocation13_spill] sm:$0xff] %v2989_v63  ;;  %v697_v5 = vadd.f32 %v696_v47, %v2986_v15  ;;  %v751_v34 = vmul.f32 %v2986_v15, %v2986_v15  ;;  %v723_v7 = vadd.f32 %v722_v52, %v2989_v63  ;;  %v753_v8 = vmul.f32 %v2989_v63, %v2989_v63  ;;  %v537_v9 = vpop.f32.mrb[8].mxu1  ;;  %v610_v10 = vpop.f32.mrb[24].mxu0 }
 0x21a   :  { %v772_v11 = vadd.f32 %v771_v62, %v750_v22  ;;  %v798_v13 = vadd.f32 %v797_v0, %v752_v28  ;;  %v3004_v14 = vmul.f32 %v2896_v57, %v537_v9  ;;  %v3007_v16 = vmul.f32 %v2899_v58, %v610_v10  ;;  %v539_v17 = vpop.f32.mrb[9].mxu1  ;;  %v612_v19 = vpop.f32.mrb[25].mxu0 }
 0x21b   :  { %v785_v23 = vadd.f32 %v784_v49, %v751_v34  ;;  %v811_v24 = vadd.f32 %v810_v54, %v753_v8  ;;  %v3010_v25 = vmul.f32 %v2902_v59, %v539_v17  ;;  %v3013_v26 = vmul.f32 %v2905_v61, %v612_v19  ;;  %v541_v30 = vpop.f32.mrb[10].mxu1  ;;  %v614_v32 = vpop.f32.mrb[26].mxu0 }
 0x21c   :  { %3954 = vst [vmem:[#allocation14_spill] sm:$0xff] %v3007_v16  ;;  %v685_v33 = vadd.f32 %v684_v18, %v3004_v14  ;;  %v754_v36 = vmul.f32 %v3004_v14, %v3004_v14  ;;  %v711_v39 = vadd.f32 %v710_v31, %v3007_v16  ;;  %v756_v40 = vmul.f32 %v3007_v16, %v3007_v16  ;;  %v543_v41 = vpop.f32.mrb[11].mxu1  ;;  %v616_v46 = vpop.f32.mrb[27].mxu0 }
 0x21d   :  { %3955 = vst [vmem:[#allocation15_spill] sm:$0xff] %v3013_v26  ;;  %v698_v47 = vadd.f32 %v697_v5, %v3010_v25  ;;  %v755_v51 = vmul.f32 %v3010_v25, %v3010_v25  ;;  %v724_v52 = vadd.f32 %v723_v7, %v3013_v26  ;;  %v757_v55 = vmul.f32 %v3013_v26, %v3013_v26 }
 0x21e   :  { %v773_v62 = vadd.f32 %v772_v11, %v754_v36  ;;  %v799_v0 = vadd.f32 %v798_v13, %v756_v40  ;;  %v3028_v49 = vmul.f32 %v2896_v57, %v541_v30  ;;  %v3031_v54 = vmul.f32 %v2899_v58, %v614_v32 }
 0x21f   :  { %v786_v18 = vadd.f32 %v785_v23, %v755_v51  ;;  %v812_v22 = vadd.f32 %v811_v24, %v757_v55  ;;  %v3034_v31 = vmul.f32 %v2902_v59, %v543_v41  ;;  %v3037_v28 = vmul.f32 %v2905_v61, %v616_v46 }
 0x220   :  { %3956 = vst [vmem:[#allocation16_spill] sm:$0xff] %v3031_v54  ;;  %v686_v5 = vadd.f32 %v685_v33, %v3028_v49  ;;  %v758_v34 = vmul.f32 %v3028_v49, %v3028_v49  ;;  %v712_v7 = vadd.f32 %v711_v39, %v3031_v54  ;;  %v760_v8 = vmul.f32 %v3031_v54, %v3031_v54 }
 0x221   :  { %3957 = vst [vmem:[#allocation17_spill] sm:$0xff] %v3037_v28  ;;  %v699_v9 = vadd.f32 %v698_v47, %v3034_v31  ;;  %v759_v10 = vmul.f32 %v3034_v31, %v3034_v31  ;;  %v725_v11 = vadd.f32 %v724_v52, %v3037_v28  ;;  %v761_v13 = vmul.f32 %v3037_v28, %v3037_v28  ;;  %v547_v17 = vpop.f32.mrb[12].mxu1  ;;  %v620_v19 = vpop.f32.mrb[28].mxu0 }
 0x222   :  { %v774_v23 = vadd.f32 %v773_v62, %v758_v34  ;;  %v800_v24 = vadd.f32 %v799_v0, %v760_v8  ;;  %v3052_v30 = vmul.f32 %v2896_v57, %v547_v17  ;;  %v3055_v32 = vmul.f32 %v2899_v58, %v620_v19  ;;  %v549_v33 = vpop.f32.mrb[13].mxu1  ;;  %v622_v36 = vpop.f32.mrb[29].mxu0 }
 0x223   :  { %v787_v39 = vadd.f32 %v786_v18, %v759_v10  ;;  %v813_v40 = vadd.f32 %v812_v22, %v761_v13  ;;  %v3058_v41 = vmul.f32 %v2902_v59, %v549_v33  ;;  %v3061_v46 = vmul.f32 %v2905_v61, %v622_v36  ;;  %v551_v47 = vpop.f32.mrb[14].mxu1  ;;  %v624_v51 = vpop.f32.mrb[30].mxu0 }
 0x224   :  { %v687_v52 = vadd.f32 %v686_v5, %v3052_v30  ;;  %v762_v55 = vmul.f32 %v3052_v30, %v3052_v30  ;;  %v713_v62 = vadd.f32 %v712_v7, %v3055_v32  ;;  %v764_v0 = vmul.f32 %v3055_v32, %v3055_v32  ;;  %v553_v18 = vpop.f32.mrb[15].mxu1  ;;  %v626_v22 = vpop.f32.mrb[31].mxu0 }
 0x225   :  { %v700_v34 = vadd.f32 %v699_v9, %v3058_v41  ;;  %v763_v8 = vmul.f32 %v3058_v41, %v3058_v41  ;;  %v726_v10 = vadd.f32 %v725_v11, %v3061_v46  ;;  %v765_v5 = vmul.f32 %v3061_v46, %v3061_v46 }
 0x226   :  { %v775_v13 = vadd.f32 %v774_v23, %v762_v55  ;;  %v801_v17 = vadd.f32 %v800_v24, %v764_v0  ;;  %v3076_v19 = vmul.f32 %v2896_v57, %v551_v47  ;;  %v3079_v7 = vmul.f32 %v2899_v58, %v624_v51 }
 0x227   :  { %v788_v33 = vadd.f32 %v787_v39, %v763_v8  ;;  %v814_v36 = vadd.f32 %v813_v40, %v765_v5  ;;  %v3082_v9 = vmul.f32 %v2902_v59, %v553_v18  ;;  %v3085_v35 = vmul.f32 %v2905_v61, %v626_v22 }
 0x228   :  { %v688_v11 = vadd.f32 %v687_v52, %v3076_v19  ;;  %v766_v23 = vmul.f32 %v3076_v19, %v3076_v19  ;;  %v714_v24 = vadd.f32 %v713_v62, %v3079_v7  ;;  %v768_v57 = vmul.f32 %v3079_v7, %v3079_v7 }
 0x229   :  { %v701_v58 = vadd.f32 %v700_v34, %v3082_v9  ;;  %v767_v39 = vmul.f32 %v3082_v9, %v3082_v9  ;;  %v727_v59 = vadd.f32 %v726_v10, %v3085_v35  ;;  %v769_v61 = vmul.f32 %v3085_v35, %v3085_v35 }
 0x22a   :  { %v689_v40 = vrot.slane %v688_v11, 4  ;;  %v776_v47 = vadd.f32 %v775_v13, %v766_v23  ;;  %v715_v51 = vrot.slane %v714_v24, 4  ;;  %v802_v52 = vadd.f32 %v801_v17, %v768_v57 }
 0x22b   :  { %v702_v55 = vrot.slane %v701_v58, 4  ;;  %v789_v0 = vadd.f32 %v788_v33, %v767_v39  ;;  %v728_v62 = vrot.slane %v727_v59, 4  ;;  %v815_v18 = vadd.f32 %v814_v36, %v769_v61 }
 0x22c   :  { %v690_v22 = vadd.f32 %v689_v40, %v688_v11  ;;  %v777_v8 = vrot.slane %v776_v47, 4  ;;  %v716_v5 = vadd.f32 %v715_v51, %v714_v24  ;;  %v803_v34 = vrot.slane %v802_v52, 4 }
 0x22d   :  { %v703_v54 = vadd.f32 %v702_v55, %v701_v58  ;;  %v790_v16 = vrot.slane %v789_v0, 4  ;;  %v729_v28 = vadd.f32 %v728_v62, %v727_v59  ;;  %v816_v26 = vrot.slane %v815_v18, 4 }
 0x22e   :  { %v691_v10 = vrot.slane %v690_v22, 2  ;;  %v778_v3 = vadd.f32 %v777_v8, %v776_v47  ;;  %v717_v21 = vrot.slane %v716_v5, 2  ;;  %v804_v63 = vadd.f32 %v803_v34, %v802_v52 }
 0x22f   :  { %v704_v29 = vrot.slane %v703_v54, 2  ;;  %v791_v13 = vadd.f32 %v790_v16, %v789_v0  ;;  %v730_v23 = vrot.slane %v729_v28, 2  ;;  %v817_v17 = vadd.f32 %v816_v26, %v815_v18 }
 0x230   :  { %v692_v57 = vadd.f32 %v691_v10, %v690_v22  ;;  %v779_v33 = vrot.slane %v778_v3, 2  ;;  %v718_v39 = vadd.f32 %v717_v21, %v716_v5  ;;  %v805_v36 = vrot.slane %v804_v63, 2 }
 0x231   :  { %v705_v11 = vadd.f32 %v704_v29, %v703_v54  ;;  %v792_v61 = vrot.slane %v791_v13, 2  ;;  %v731_v24 = vadd.f32 %v730_v23, %v729_v28  ;;  %v818_v40 = vrot.slane %v817_v17, 2 }
 0x232   :  { %v693_v58 = vrot.slane %v692_v57, 1  ;;  %v780_v51 = vadd.f32 %v779_v33, %v778_v3  ;;  %v719_v59 = vrot.slane %v718_v39, 1  ;;  %v806_v55 = vadd.f32 %v805_v36, %v804_v63 }
 0x233   :  { %v706_v62 = vrot.slane %v705_v11, 1  ;;  %v793_v47 = vadd.f32 %v792_v61, %v791_v13  ;;  %v732_v8 = vrot.slane %v731_v24, 1  ;;  %v819_v52 = vadd.f32 %v818_v40, %v817_v17 }
 0x234   :  { %v694_v34 = vadd.f32 %v693_v58, %v692_v57  ;;  %v781_v16 = vrot.slane %v780_v51, 1  ;;  %v720_v0 = vadd.f32 %v719_v59, %v718_v39  ;;  %v807_v26 = vrot.slane %v806_v55, 1 }
 0x235   :  { %v707_v18 = vadd.f32 %v706_v62, %v705_v11  ;;  %v794_v22 = vrot.slane %v793_v47, 1  ;;  %v733_v21 = vadd.f32 %v732_v8, %v731_v24  ;;  %v820_v5 = vrot.slane %v819_v52, 1 }
 0x236   :  { %v3099_v29 = vmul.f32 0.015625, %v694_v34  ;;  %v782_v54 = vadd.f32 %v781_v16, %v780_v51  ;;  %v3101_v28 = vmul.f32 0.015625, %v720_v0  ;;  %v808_v3 = vadd.f32 %v807_v26, %v806_v55 }
 0x237   :  { %v3103_v10 = vmul.f32 0.015625, %v707_v18  ;;  %v795_v63 = vadd.f32 %v794_v22, %v793_v47  ;;  %v3105_v13 = vmul.f32 0.015625, %v733_v21  ;;  %v821_v23 = vadd.f32 %v820_v5, %v819_v52 }
 0x238   :  { %v822_v17 = vmul.f32 0.015625, %v782_v54  ;;  %v826_v57 = vmul.f32 %v3099_v29, %v3099_v29  ;;  %v824_v33 = vmul.f32 0.015625, %v808_v3  ;;  %v828_v39 = vmul.f32 %v3101_v28, %v3101_v28 }
 0x239   :  { %v823_v36 = vmul.f32 0.015625, %v795_v63  ;;  %v827_v11 = vmul.f32 %v3103_v10, %v3103_v10  ;;  %v825_v61 = vmul.f32 0.015625, %v821_v23  ;;  %v829_v24 = vmul.f32 %v3105_v13, %v3105_v13 }
 0x23a   :  { %v830_v40 = vsub.f32 %v822_v17, %v826_v57  ;;  %v832_v58 = vsub.f32 %v824_v33, %v828_v39  ;;  %v3120_v17 = vld [vmem:[%s3920_s3 + $0x1c0] sm:$0xff]  ;;  %v3128_v33 = vld [vmem:[%s3920_s3 + $0x1d0] sm:$0xff] }
 0x23b   :  { %v831_v51 = vsub.f32 %v823_v36, %v827_v11  ;;  %v833_v59 = vsub.f32 %v825_v61, %v829_v24  ;;  %v2290_v57 = vld [vmem:[%s3921_s4 + $0x2] ss:$8 sm:$0xf] }
 0x23c   :  { %v834_v55 = vmax.f32 %v830_v40, 0.0  ;;  %v836_v62 = vmax.f32 %v832_v58, 0.0  ;;  %v3134_v36 = vld [vmem:[%s3920_s3 + $0x200] sm:$0xff]  ;;  %v3139_v11 = vld [vmem:[%s3920_s3 + $0x210] sm:$0xff]  ;;  %v3969_v58 = vld [vmem:[#allocation16_spill] sm:$0xff] }
 0x23d   :  { %v835_v47 = vmax.f32 %v831_v51, 0.0  ;;  %v837_v8 = vmax.f32 %v833_v59, 0.0  ;;  %v3148_v59 = vld [vmem:[%s3920_s3 + $0x1f8] sm:$0xff] }
 0x23e   :  { %v838_v52 = vadd.f32 1e-05, %v834_v55  ;;  %v840_v34 = vadd.f32 1e-05, %v836_v62  ;;  %v3153_v55 = vld [vmem:[%s3920_s3 + $0x208] sm:$0xff] }
 0x23f   :  { %v839_v16 = vadd.f32 1e-05, %v835_v47  ;;  %v841_v0 = vadd.f32 1e-05, %v837_v8 }
 0x240   :  { %2444 = vrsqrt.f32 %v838_v52 }
 0x241   :  { %2446 = vrsqrt.f32 %v840_v34 }
 0x242   :  { %2448 = vrsqrt.f32 %v839_v16 }
 0x243   :  { %2450 = vrsqrt.f32 %v841_v0 }
 0x24a   :  { %v2445_v26 = vpop.eup %2444 }
 0x24b   :  { %v2447_v18 = vpop.eup %2446 }
 0x24c   :  { %v2449_v22 = vpop.eup %2448 }
 0x24d   :  { %v2451_v21 = vpop.eup %2450  ;;  %v850_v5 = vcombine.low %v2445_v26, %v2449_v22  ;;  %v3215_v22 = vld [vmem:[%s3920_s3 + $0x270] sm:$0xff] }
 0x24e   :  { %v851_v54 = vcombine.low %v2447_v18, %v2451_v21  ;;  %v3170_v18 = vld [vmem:[%s3920_s3 + $0x238] sm:$0xff] }
 0x24f   :  { %v858_v3 = vrot.slane %v850_v5, %v2719_v37 }
 0x250   :  { %v865_v63 = vrot.slane %v851_v54, %v2719_v37 }
 0x252   :  { %v866_v23 = vcombine.low %v858_v3, %v865_v63  ;;  %v3179_v3 = vld [vmem:[%s3920_s3 + $0x248] sm:$0xff]  ;;  %v3184_v63 = vld [vmem:[%s3920_s3 + $0x230] sm:$0xff] }
 0x254   :  { %v873_v39 = vrot.slane %v866_v23, %v2719_v37  ;;  %v3189_v23 = vld [vmem:[%s3920_s3 + $0x240] sm:$0xff] }
 0x256   :  { %v875_v24 = vmul.f32 %v2290_v57, %v873_v39 }
 0x258   :  { %v880_v34 = vrot.slane %v875_v24, %v2727_v44  ;;  %v884_v16 = vrot.slane %v875_v24, %v2730_v45  ;;  %v3162_v0 = vrot.slane %v875_v24, %v2887_v53  ;;  %v3165_v26 = vrot.slane %v875_v24, %v2893_v56 }
 0x25a   :  { %v3193_v57 = vmul.f32 %v3165_v26, %v3085_v35  ;;  %v929_v39 = vmul.f32 %v880_v34, %v3099_v29  ;;  %v930_v24 = vmul.f32 %v884_v16, %v3103_v10  ;;  %v931_v54 = vmul.f32 %v3162_v0, %v3101_v28  ;;  %v3238_v28 = vld [vmem:[%s3920_s3 + $0x278] sm:$0xff] }
 0x25b   :  { %v932_v5 = vmul.f32 %v3165_v26, %v3105_v13  ;;  %v3208_v62 = vmul.f32 %v884_v16, %v3010_v25  ;;  %v3227_v25 = vmul.f32 %v880_v34, %v3028_v49  ;;  %v3233_v13 = vld [vmem:[%s3920_s3 + $0x268] sm:$0xff]  ;;  %3959 = vst [vmem:[#allocation19_spill] sm:$0xff] %v3238_v28  ;;  %v3245_v49 = vmul.f32 %v884_v16, %v3082_v9 }
 0x25c   :  { %v937_v8 = vcombine.low %v929_v39, %v930_v24  ;;  %v3220_v39 = vld [vmem:[%s3920_s3 + $0x280] sm:$0xff]  ;;  %3958 = vst [vmem:[#allocation18_spill] sm:$0xff] %v3233_v13  ;;  %v3254_v52 = vmul.f32 %v880_v34, %v3076_v19  ;;  %v902_v29 = vmul.f32 %v884_v16, %v2926_v6  ;;  %v897_v47 = vmul.f32 %v880_v34, %v2908_v38 }
 0x25d   :  { %v938_v10 = vcombine.low %v931_v54, %v932_v5  ;;  %v3224_v5 = vmul.f32 %v884_v16, %v3034_v31  ;;  %v3242_v31 = vmul.f32 %v884_v16, %v3058_v41  ;;  %v3248_v54 = vmul.f32 %v880_v34, %v3052_v30  ;;  %v2291_v30 = vld [vmem:[%s3921_s4 + $0x3] ss:$8 sm:$0xf] }
 0x25e   :  { %v945_v24 = vrot.slane %v937_v8, %v2719_v37  ;;  %v901_v35 = vmul.f32 %v880_v34, %v2920_v60  ;;  %v906_v19 = vmul.f32 %v884_v16, %v2962_v27  ;;  %v3271_v9 = vmul.f32 %v3165_v26, %v3061_v46  ;;  %v3963_v46 = vld [vmem:[#allocation13_spill] sm:$0xff] }
 0x25f   :  { %v952_v8 = vrot.slane %v938_v10, %v2719_v37  ;;  %v898_v10 = vmul.f32 %v884_v16, %v2914_v48  ;;  %v910_v48 = vmul.f32 %v884_v16, %v2986_v15  ;;  %v909_v41 = vmul.f32 %v880_v34, %v2980_v1  ;;  %v3965_v16 = vld [vmem:[#allocation12_spill] sm:$0xff] }
 0x260   :  { %v913_v6 = vmul.f32 %v880_v34, %v3004_v14  ;;  %v3277_v38 = vmul.f32 %v3162_v0, %v3055_v32  ;;  %v3281_v60 = vmul.f32 %v3162_v0, %v3079_v7  ;;  %v3289_v27 = vmul.f32 %v3165_v26, %v2929_v12  ;;  %v3962_v14 = vld [vmem:[#allocation11_spill] sm:$0xff]  ;;  %v3964_v7 = vld [vmem:[#allocation10_spill] sm:$0xff] }
 0x261   :  { %v953_v21 = vcombine.low %v945_v24, %v952_v8  ;;  %v905_v8 = vmul.f32 %v880_v34, %v2956_v20  ;;  %v3285_v20 = vmul.f32 %v3165_v26, %v2917_v50  ;;  %v3293_v1 = vmul.f32 %v3162_v0, %v2911_v4 }
 0x262   :  { %3960 = vst [vmem:[#allocation20_spill] sm:$0xff] %v3277_v38  ;;  %3961 = vst [vmem:[#allocation21_spill] sm:$0xff] %v3281_v60  ;;  %v3297_v15 = vmul.f32 %v3162_v0, %v2923_v2  ;;  %v3301_v32 = vmul.f32 %v3165_v26, %v3962_v14  ;;  %v3305_v50 = vmul.f32 %v3165_v26, %v3963_v46  ;;  %v3967_v14 = vld [vmem:[#allocation17_spill] sm:$0xff] }
 0x263   :  { %v960_v24 = vrot.slane %v953_v21, %v2719_v37  ;;  %v3309_v12 = vmul.f32 %v3162_v0, %v3964_v7  ;;  %v3322_v21 = vmul.f32 %v3162_v0, %v3965_v16  ;;  %v3330_v46 = vmul.f32 %v3165_v26, %v3967_v14  ;;  %v3968_v7 = vld [vmem:[#allocation14_spill] sm:$0xff] }
 0x264   :  { %v3334_v51 = vmul.f32 %v3162_v0, %v3968_v7  ;;  %v3338_v40 = vmul.f32 %v3162_v0, %v3969_v58 }
 0x265   :  { %v962_v37 = vsub.f32 %v2291_v30, %v960_v24  ;;  %v3966_v30 = vld [vmem:[#allocation15_spill] sm:$0xff] }
 0x266   :  { %v3326_v24 = vmul.f32 %v3165_v26, %v3966_v30 }
 0x267   :  { %v3312_v34 = vrot.slane %v962_v37, %v2727_v44  ;;  %v3315_v4 = vrot.slane %v962_v37, %v2730_v45  ;;  %v3318_v2 = vrot.slane %v962_v37, %v2893_v56  ;;  %v3352_v58 = vrot.slane %v962_v37, %v2887_v53 }
 0x269   :  { %v3342_v16 = vadd.f32 %v3318_v2, %v3193_v57  ;;  %v985_v61 = vadd.f32 %v3315_v4, %v898_v10  ;;  %v989_v30 = vadd.f32 %v3315_v4, %v902_v29  ;;  %v984_v56 = vadd.f32 %v3312_v34, %v897_v47 }
 0x26a   :  { %v988_v26 = vadd.f32 %v3312_v34, %v901_v35  ;;  %v993_v14 = vadd.f32 %v3315_v4, %v906_v19  ;;  %v997_v7 = vadd.f32 %v3315_v4, %v910_v48  ;;  %v992_v45 = vadd.f32 %v3312_v34, %v905_v8 }
 0x26b   :  { %vm1017_vm2 = vcmp.ge.f32.partialorder %v985_v61, 0.0  ;;  %vm1021_vm3 = vcmp.ge.f32.partialorder %v989_v30, 0.0  ;;  %v1049_v0 = vmul.f32 0.01, %v985_v61  ;;  %v1053_v57 = vmul.f32 0.01, %v989_v30 }
 0x26c   :  { %vm1016_vm4 = vcmp.ge.f32.partialorder %v984_v56, 0.0  ;;  %vm1020_vm5 = vcmp.ge.f32.partialorder %v988_v26, 0.0  ;;  %v1048_v29 = vmul.f32 0.01, %v984_v56  ;;  %v1052_v47 = vmul.f32 0.01, %v988_v26 }
 0x26d   :  { %v1081_v10 = vsel %vm1017_vm2, %v985_v61, %v1049_v0  ;;  %vm1025_vm6 = vcmp.ge.f32.partialorder %v993_v14, 0.0  ;;  %vm1029_vm7 = vcmp.ge.f32.partialorder %v997_v7, 0.0  ;;  %v1085_v35 = vsel %vm1021_vm3, %v989_v30, %v1053_v57 }
 0x26e   :  { %v1080_v19 = vsel %vm1016_vm4, %v984_v56, %v1048_v29  ;;  %v1057_v44 = vmul.f32 0.01, %v993_v14  ;;  %v1061_v48 = vmul.f32 0.01, %v997_v7  ;;  %v3354_v60 = vpack.c.bf16 %v1085_v35, %v1081_v10 }
 0x26f   :  { %v1084_v8 = vsel %vm1020_vm5, %v988_v26, %v1052_v47  ;;  %v996_v37 = vadd.f32 %v3312_v34, %v909_v41  ;;  %vm1024_vm8 = vcmp.ge.f32.partialorder %v992_v45, 0.0  ;;  %v1056_v13 = vmul.f32 0.01, %v992_v45 }
 0x270   :  { %v3357_v53 = vpack.c.bf16 %v1084_v8, %v1080_v19  ;;  %v1089_v38 = vsel %vm1025_vm6, %v993_v14, %v1057_v44  ;;  %v1093_v28 = vsel %vm1029_vm7, %v997_v7, %v1061_v48  ;;  %1496 = vmatprep.mubr.bf16.mxu1 %v3354_v60  ;;  %1642 = vmatprep.mubr.bf16.mxu0 %v3354_v60  ;;  %v1386_v14 = vunpack.c.h.s8.bf16 %v3215_v22 }
 0x271   :  { %v3361_v61 = vpack.c.bf16 %v1093_v28, %v1089_v38  ;;  %vm1028_vm9 = vcmp.ge.f32.partialorder %v996_v37, 0.0  ;;  %v1060_v56 = vmul.f32 0.01, %v996_v37  ;;  %v1001_v30 = vadd.f32 %v3315_v4, %v3208_v62 }
 0x272   :  { %1497 = vmatmul.mubr.bf16.vlgmr.msra.gmra.mrb[16].mxu1 %v3357_v53  ;;  %1643 = vmatmul.mubr.bf16.vlgmr.msra.gmra.mrb[32].mxu0 %v3357_v53  ;;  %v1088_v41 = vsel %vm1024_vm8, %v992_v45, %v1056_v13  ;;  %v1005_v44 = vadd.f32 %v3315_v4, %v3224_v5  ;;  %v1000_v26 = vadd.f32 %v3312_v34, %v913_v6  ;;  %v3970_v28 = vunpack.c.l.s8.bf16 %v3120_v17 }
 0x273   :  { %v3971_v38 = vunpack.c.l.s8.bf16 %v3128_v33  ;;  %v1092_v7 = vsel %vm1028_vm9, %v996_v37, %v1060_v56  ;;  %vm1033_vm10 = vcmp.ge.f32.partialorder %v1001_v30, 0.0  ;;  %v1065_v62 = vmul.f32 0.01, %v1001_v30  ;;  %1506 = vmatprep.mubr.bf16.mxu1 %v3361_v61  ;;  %1652 = vmatprep.mubr.bf16.mxu0 %v3361_v61 }
 0x274   :  { %1538 = vmatpush1.bf16.msra.mxu1 %v3970_v28  ;;  %v1004_v0 = vadd.f32 %v3312_v34, %v3227_v25  ;;  %v3379_v45 = vpack.c.bf16 %v1092_v7, %v1088_v41  ;;  %vm1037_vm11 = vcmp.ge.f32.partialorder %v1005_v44, 0.0  ;;  %v1069_v13 = vmul.f32 0.01, %v1005_v44 }
 0x275   :  { %1684 = vmatpush1.bf16.msra.mxu0 %v3971_v38  ;;  %vm1032_vm12 = vcmp.ge.f32.partialorder %v1000_v26, 0.0  ;;  %v3972_v5 = vunpack.c.h.s8.bf16 %v2877_v42  ;;  %v3973_v6 = vunpack.c.h.s8.bf16 %v2882_v43  ;;  %v1097_v57 = vsel %vm1033_vm10, %v1001_v30, %v1065_v62 }
 0x276   :  { %vm1036_vm13 = vcmp.ge.f32.partialorder %v1004_v0, 0.0  ;;  %v1064_v29 = vmul.f32 0.01, %v1000_v26  ;;  %v1068_v10 = vmul.f32 0.01, %v1004_v0  ;;  %v1101_v25 = vsel %vm1037_vm11, %v1005_v44, %v1069_v13 }
 0x277   :  { %1539 = vmatprep.subr.bf16.mxu1 %v3972_v5  ;;  %1685 = vmatprep.subr.bf16.mxu0 %v3973_v6  ;;  %v1009_v47 = vadd.f32 %v3315_v4, %v3242_v31  ;;  %v1013_v35 = vadd.f32 %v3315_v4, %v3245_v49  ;;  %v1008_v19 = vadd.f32 %v3312_v34, %v3248_v54  ;;  %v3974_v42 = vunpack.c.h.s8.bf16 %v3120_v17 }
 0x278   :  { %v3975_v43 = vunpack.c.h.s8.bf16 %v3128_v33  ;;  %v3395_v48 = vpack.c.bf16 %v1101_v25, %v1097_v57  ;;  %v1096_v8 = vsel %vm1032_vm12, %v1000_v26, %v1064_v29  ;;  %v1100_v37 = vsel %vm1036_vm13, %v1004_v0, %v1068_v10 }
 0x279   :  { %1540 = vmatpush1.bf16.msra.mxu1 %v3974_v42  ;;  %v1388_v56 = vunpack.c.h.s8.bf16 %v3220_v39  ;;  %v3976_v31 = vunpack.c.l.s8.bf16 %v3134_v36  ;;  %v3977_v49 = vunpack.c.l.s8.bf16 %v3139_v11  ;;  %v3402_v4 = vpack.c.bf16 %v1100_v37, %v1096_v8 }
 0x27a   :  { %1686 = vmatpush1.bf16.msra.mxu0 %v3975_v43  ;;  %vm1041_vm14 = vcmp.ge.f32.partialorder %v1009_v47, 0.0  ;;  %vm1045_vm15 = vcmp.ge.f32.partialorder %v1013_v35, 0.0  ;;  %v1073_v17 = vmul.f32 0.01, %v1009_v47  ;;  %v1077_v54 = vmul.f32 0.01, %v1013_v35  ;;  %1507 = vmatmul.mubr.bf16.gmra.mrb[20].mxu1 %v3379_v45 }
 0x27b   :  { %1541 = vmatprep.subr.bf16.mxu1 %v3976_v31  ;;  %1687 = vmatprep.subr.bf16.mxu0 %v3977_v49  ;;  %v1012_v33 = vadd.f32 %v3312_v34, %v3254_v52  ;;  %vm1040_vm0 = vcmp.ge.f32.partialorder %v1008_v19, 0.0  ;;  %v1072_v30 = vmul.f32 0.01, %v1008_v19  ;;  %v3407_v41 = vmul.f32 0.01, %v3342_v16 }
 0x27c   :  { %1653 = vmatmul.mubr.bf16.gmra.mrb[36].mxu0 %v3379_v45  ;;  %v1105_v44 = vsel %vm1041_vm14, %v1009_v47, %v1073_v17  ;;  %v987_v26 = vadd.f32 %v3318_v2, %v3285_v20  ;;  %v991_v28 = vadd.f32 %v3318_v2, %v3289_v27  ;;  %v3978_v38 = vunpack.c.l.s8.bf16 %v3148_v59  ;;  %1516 = vmatprep.mubr.bf16.mxu1 %v3395_v48 }
 0x27d   :  { %v3979_v52 = vunpack.c.l.s8.bf16 %v3153_v55  ;;  %v1109_v34 = vsel %vm1045_vm15, %v1013_v35, %v1077_v54  ;;  %vm1044_vm1 = vcmp.ge.f32.partialorder %v1012_v33, 0.0  ;;  %v1076_v7 = vmul.f32 0.01, %v1012_v33  ;;  %1662 = vmatprep.mubr.bf16.mxu0 %v3395_v48 }
 0x27e   :  { %1542 = vmatpush1.bf16.msra.mxu1 %v3978_v38  ;;  %v1104_v62 = vsel %vm1040_vm0, %v1008_v19, %v1072_v30  ;;  %v3421_v0 = vpack.c.bf16 %v1109_v34, %v1105_v44  ;;  %vm1019_vm2 = vcmp.ge.f32.partialorder %v987_v26, 0.0  ;;  %vm1023_vm3 = vcmp.ge.f32.partialorder %v991_v28, 0.0 }
 0x27f   :  { %1688 = vmatpush1.bf16.msra.mxu0 %v3979_v52  ;;  %v1051_v20 = vmul.f32 0.01, %v987_v26  ;;  %v3980_v27 = vunpack.c.h.s8.bf16 %v3134_v36  ;;  %v3981_v13 = vunpack.c.h.s8.bf16 %v3139_v11  ;;  %v1108_v5 = vsel %vm1044_vm1, %v1012_v33, %v1076_v7 }
 0x280   :  { %v1055_v6 = vmul.f32 0.01, %v991_v28  ;;  %v986_v57 = vadd.f32 %v3352_v58, %v3293_v1  ;;  %v990_v29 = vadd.f32 %v3352_v58, %v3297_v15  ;;  %v3431_v10 = vpack.c.bf16 %v1108_v5, %v1104_v62 }
 0x281   :  { %1543 = vmatprep.subr.bf16.mxu1 %v3980_v27  ;;  %1689 = vmatprep.subr.bf16.mxu0 %v3981_v13  ;;  %v1083_v25 = vsel %vm1019_vm2, %v987_v26, %v1051_v20  ;;  %v995_v47 = vadd.f32 %v3318_v2, %v3301_v32  ;;  %v999_v36 = vadd.f32 %v3318_v2, %v3305_v50  ;;  %v3982_v11 = vunpack.c.h.s8.bf16 %v3148_v59 }
 0x282   :  { %v3983_v35 = vunpack.c.h.s8.bf16 %v3153_v55  ;;  %v1087_v19 = vsel %vm1023_vm3, %v991_v28, %v1055_v6  ;;  %vm1018_vm4 = vcmp.ge.f32.partialorder %v986_v57, 0.0  ;;  %vm1022_vm5 = vcmp.ge.f32.partialorder %v990_v29, 0.0  ;;  %1517 = vmatmul.mubr.bf16.gmra.mrb[24].mxu1 %v3402_v4 }
 0x283   :  { %1544 = vmatpush1.bf16.msra.mxu1 %v3982_v11  ;;  %v1050_v1 = vmul.f32 0.01, %v986_v57  ;;  %v3984_v15 = vunpack.c.l.s8.bf16 %v3170_v18  ;;  %v3985_v42 = vunpack.c.l.s8.bf16 %v3179_v3  ;;  %v3445_v32 = vpack.c.bf16 %v1087_v19, %v1083_v25  ;;  %1526 = vmatprep.mubr.bf16.mxu1 %v3421_v0  ;;  %v3994_v25 = vld [vmem:[#allocation18_spill] sm:$0xff] }
 0x284   :  { %1690 = vmatpush1.bf16.msra.mxu0 %v3983_v35  ;;  %v1054_v43 = vmul.f32 0.01, %v990_v29  ;;  %vm1027_vm6 = vcmp.ge.f32.partialorder %v995_v47, 0.0  ;;  %vm1031_vm7 = vcmp.ge.f32.partialorder %v999_v36, 0.0  ;;  %v1059_v50 = vmul.f32 0.01, %v995_v47 }
 0x285   :  { %1545 = vmatprep.subr.bf16.mxu1 %v3984_v15  ;;  %1691 = vmatprep.subr.bf16.mxu0 %v3985_v42  ;;  %v1082_v59 = vsel %vm1018_vm4, %v986_v57, %v1050_v1  ;;  %v1063_v8 = vmul.f32 0.01, %v999_v36  ;;  %v994_v55 = vadd.f32 %v3352_v58, %v3309_v12  ;;  %v998_v31 = vadd.f32 %v3352_v58, %v3322_v21  ;;  %v3996_v1 = vld [vmem:[#allocation19_spill] sm:$0xff] }
 0x286   :  { %1663 = vmatmul.mubr.bf16.gmra.mrb[40].mxu0 %v3402_v4  ;;  %v1086_v37 = vsel %vm1022_vm5, %v990_v29, %v1054_v43  ;;  %v1003_v49 = vadd.f32 %v3318_v2, %v3326_v24  ;;  %vm1047_vm8 = vcmp.ge.f32.partialorder %v3342_v16, 0.0  ;;  %v3986_v17 = vunpack.c.l.s8.bf16 %v3184_v63 }
 0x287   :  { %v3987_v54 = vunpack.c.l.s8.bf16 %v3189_v23  ;;  %v3460_v12 = vpack.c.bf16 %v1086_v37, %v1082_v59  ;;  %v1091_v33 = vsel %vm1027_vm6, %v995_v47, %v1059_v50  ;;  %v1095_v30 = vsel %vm1031_vm7, %v999_v36, %v1063_v8  ;;  %1672 = vmatprep.mubr.bf16.mxu0 %v3421_v0  ;;  %v1198_v37 = vld [vmem:[%s3920_s3 + $0x2b0] sm:$0xff] }
 0x288   :  { %1546 = vmatpush1.bf16.msra.mxu1 %v3986_v17  ;;  %vm1026_vm9 = vcmp.ge.f32.partialorder %v994_v55, 0.0  ;;  %v3464_v21 = vpack.c.bf16 %v1095_v30, %v1091_v33  ;;  %vm1030_vm10 = vcmp.ge.f32.partialorder %v998_v31, 0.0  ;;  %v1058_v24 = vmul.f32 0.01, %v994_v55 }
 0x289   :  { %1692 = vmatpush1.bf16.msra.mxu0 %v3987_v54  ;;  %v1062_v44 = vmul.f32 0.01, %v998_v31  ;;  %v3988_v26 = vunpack.c.h.s8.bf16 %v3170_v18  ;;  %v3989_v28 = vunpack.c.h.s8.bf16 %v3179_v3  ;;  %v1007_v38 = vadd.f32 %v3318_v2, %v3330_v46 }
 0x28a   :  { %vm1035_vm11 = vcmp.ge.f32.partialorder %v1003_v49, 0.0  ;;  %v1067_v52 = vmul.f32 0.01, %v1003_v49  ;;  %v1002_v34 = vadd.f32 %v3352_v58, %v3334_v51  ;;  %v1090_v7 = vsel %vm1026_vm9, %v994_v55, %v1058_v24  ;;  %1527 = vmatmul.mubr.bf16.gmra.mrb[28].mxu1 %v3431_v10  ;;  %v1196_v55 = vld [vmem:[%s3920_s3 + $0x2a0] sm:$0xff] }
 0x28b   :  { %1547 = vmatprep.subr.bf16.mxu1 %v3988_v26  ;;  %1693 = vmatprep.subr.bf16.mxu0 %v3989_v28  ;;  %v1094_v62 = vsel %vm1030_vm10, %v998_v31, %v1062_v44  ;;  %v1006_v20 = vadd.f32 %v3352_v58, %v3338_v40  ;;  %v1011_v18 = vadd.f32 %v3318_v2, %v3271_v9  ;;  %v3990_v27 = vunpack.c.h.s8.bf16 %v3184_v63  ;;  %v1197_v63 = vld [vmem:[%s3920_s3 + $0x2a8] sm:$0xff] }
 0x28c   :  { %v3991_v3 = vunpack.c.h.s8.bf16 %v3189_v23  ;;  %v3482_v46 = vpack.c.bf16 %v1094_v62, %v1090_v7  ;;  %vm1039_vm12 = vcmp.ge.f32.partialorder %v1007_v38, 0.0  ;;  %v1071_v13 = vmul.f32 0.01, %v1007_v38  ;;  %v1199_v23 = vld [vmem:[%s3920_s3 + $0x2b8] sm:$0xff]  ;;  %1569 = vmatprep.mubr.bf16.mxu1 %v3445_v32  ;;  %v1205_v62 = vld [vmem:[%s3920_s3 + $0x2e8] sm:$0xff] }
 0x28d   :  { %1548 = vmatpush1.bf16.msra.mxu1 %v3990_v27  ;;  %v1099_v5 = vsel %vm1035_vm11, %v1003_v49, %v1067_v52  ;;  %v3992_v51 = vunpack.c.l.s8.bf16 %v3215_v22  ;;  %v3993_v6 = vunpack.c.l.s8.bf16 %v3220_v39  ;;  %vm1034_vm13 = vcmp.ge.f32.partialorder %v1002_v34, 0.0  ;;  %v3999_v49 = vld [vmem:[#allocation21_spill] sm:$0xff]  ;;  %v1206_v39 = vld [vmem:[%s3920_s3 + $0x2f0] sm:$0xff]  ;;  %v1203_v7 = vld [vmem:[%s3920_s3 + $0x2d8] sm:$0xff] }
 0x28e   :  { %1694 = vmatpush1.bf16.msra.mxu0 %v3991_v3  ;;  %vm1038_vm14 = vcmp.ge.f32.partialorder %v1006_v20, 0.0  ;;  %v1066_v40 = vmul.f32 0.01, %v1002_v34  ;;  %v1070_v9 = vmul.f32 0.01, %v1006_v20  ;;  %v1103_v2 = vsel %vm1039_vm12, %v1007_v38, %v1071_v13  ;;  %v1204_v22 = vld [vmem:[%s3920_s3 + $0x2e0] sm:$0xff] }
 0x28f   :  { %1549 = vmatprep.subr.bf16.mxu1 %v3992_v51  ;;  %1695 = vmatprep.subr.bf16.mxu0 %v3993_v6  ;;  %vm1043_vm15 = vcmp.ge.f32.partialorder %v1011_v18, 0.0  ;;  %v1075_v57 = vmul.f32 0.01, %v1011_v18  ;;  %v1111_v29 = vsel %vm1047_vm8, %v3342_v16, %v3407_v41  ;;  %v1385_v47 = vunpack.c.h.s8.bf16 %v3994_v25  ;;  %v3998_v41 = vld [vmem:[#allocation20_spill] sm:$0xff] }
 0x290   :  { %1673 = vmatmul.mubr.bf16.gmra.mrb[44].mxu0 %v3431_v10  ;;  %v3501_v36 = vpack.c.bf16 %v1103_v2, %v1099_v5  ;;  %v1098_v11 = vsel %vm1034_vm13, %v1002_v34, %v1066_v40  ;;  %v1102_v35 = vsel %vm1038_vm14, %v1006_v20, %v1070_v9  ;;  %v3995_v19 = vunpack.c.l.s8.bf16 %v3994_v25  ;;  %v1211_v13 = vld [vmem:[%s3920_s3 + $0x318] sm:$0xff]  ;;  %v1213_v5 = vld [vmem:[%s3920_s3 + $0x328] sm:$0xff] }
 0x291   :  { %v3997_v15 = vunpack.c.l.s8.bf16 %v3996_v1  ;;  %v1387_v42 = vunpack.c.h.s8.bf16 %v3996_v1  ;;  %v3508_v43 = vpack.c.bf16 %v1102_v35, %v1098_v11  ;;  %v1107_v16 = vsel %vm1043_vm15, %v1011_v18, %v1075_v57  ;;  %1715 = vmatprep.mubr.bf16.mxu0 %v3445_v32  ;;  %v1220_v11 = vld [vmem:[%s3920_s3 + $0x360] sm:$0xff] }
 0x292   :  { %1550 = vmatpush1.bf16.msra.mxu1 %v3995_v19  ;;  %v1010_v59 = vadd.f32 %v3352_v58, %v3998_v41  ;;  %v1393_v50 = vunpack.c.l.s8.bf16 %v1197_v63  ;;  %v1395_v8 = vunpack.c.l.s8.bf16 %v1199_v23  ;;  %v3520_v31 = vpack.c.bf16 %v1111_v29, %v1107_v16  ;;  %v1219_v16 = vld [vmem:[%s3920_s3 + $0x358] sm:$0xff] }
 0x293   :  { %1696 = vmatpush1.bf16.msra.mxu0 %v3997_v15  ;;  %v1014_v17 = vadd.f32 %v3352_v58, %v3999_v49  ;;  %1551 = vmatprep.subr.bf16.mxu1 %v1386_v14  ;;  %v1392_v30 = vunpack.c.l.s8.bf16 %v1196_v55  ;;  %v1394_v24 = vunpack.c.l.s8.bf16 %v1198_v37  ;;  %v1400_v26 = vunpack.c.h.s8.bf16 %v1197_v63  ;;  %v1210_v63 = vld [vmem:[%s3920_s3 + $0x310] sm:$0xff] }
 0x294   :  { %1697 = vmatprep.subr.bf16.mxu0 %v1388_v56  ;;  %vm1042_vm0 = vcmp.ge.f32.partialorder %v1010_v59, 0.0  ;;  %v1074_v54 = vmul.f32 0.01, %v1010_v59  ;;  %v1402_v28 = vunpack.c.h.s8.bf16 %v1199_v23  ;;  %v1399_v56 = vunpack.c.h.s8.bf16 %v1196_v55  ;;  %v1212_v23 = vld [vmem:[%s3920_s3 + $0x320] sm:$0xff]  ;;  %v1117_v55 = vld [vmem:[%s3920_s3 + $0x28] sm:$0xff] }
 0x295   :  { %vm1046_vm1 = vcmp.ge.f32.partialorder %v1014_v17, 0.0  ;;  %v1078_v33 = vmul.f32 0.01, %v1014_v17  ;;  %v1401_v38 = vunpack.c.h.s8.bf16 %v1198_v37  ;;  %v1407_v52 = vunpack.c.l.s8.bf16 %v1204_v22  ;;  %v1146_v37 = vld [vmem:[%s3920_s3 + $0x110] sm:$0xff] }
 0x296   :  { %1552 = vmatpush1.bf16.msra.mxu1 %v1385_v47  ;;  %v1106_v44 = vsel %vm1042_vm0, %v1010_v59, %v1074_v54  ;;  %v1409_v34 = vunpack.c.l.s8.bf16 %v1206_v39  ;;  %v1406_v20 = vunpack.c.l.s8.bf16 %v1203_v7  ;;  %v1408_v18 = vunpack.c.l.s8.bf16 %v1205_v62  ;;  %v1218_v47 = vld [vmem:[%s3920_s3 + $0x350] sm:$0xff] }
 0x297   :  { %1698 = vmatpush1.bf16.msra.mxu0 %v1387_v42  ;;  %1553 = vmatprep.subr.bf16.mxu1 %v1393_v50  ;;  %v1110_v58 = vsel %vm1046_vm1, %v1014_v17, %v1078_v33  ;;  %v1414_v27 = vunpack.c.h.s8.bf16 %v1204_v22  ;;  %v1416_v3 = vunpack.c.h.s8.bf16 %v1206_v39  ;;  %v1413_v51 = vunpack.c.h.s8.bf16 %v1203_v7  ;;  %v1217_v42 = vld [vmem:[%s3920_s3 + $0x348] sm:$0xff]  ;;  %v1124_v22 = vld [vmem:[%s3920_s3 + $0x60] sm:$0xff]  ;;  %v1123_v7 = vld [vmem:[%s3920_s3 + $0x58] sm:$0xff] }
 0x298   :  { %1699 = vmatprep.subr.bf16.mxu0 %v1395_v8  ;;  %v3534_v14 = vpack.c.bf16 %v1110_v58, %v1106_v44  ;;  %v1415_v6 = vunpack.c.h.s8.bf16 %v1205_v62  ;;  %v1421_v40 = vunpack.c.l.s8.bf16 %v1211_v13  ;;  %v1423_v9 = vunpack.c.l.s8.bf16 %v1213_v5  ;;  %v1153_v39 = vld [vmem:[%s3920_s3 + $0x148] sm:$0xff] }
 0x299   :  { %v1420_v2 = vunpack.c.l.s8.bf16 %v1210_v63  ;;  %v1422_v57 = vunpack.c.l.s8.bf16 %v1212_v23  ;;  %v1428_v29 = vunpack.c.h.s8.bf16 %v1211_v13  ;;  %v1430_v25 = vunpack.c.h.s8.bf16 %v1213_v5  ;;  %v1125_v62 = vld [vmem:[%s3920_s3 + $0x68] sm:$0xff]  ;;  %v1131_v13 = vld [vmem:[%s3920_s3 + $0x98] sm:$0xff]  ;;  %v1160_v5 = vld [vmem:[%s3920_s3 + $0x180] sm:$0xff] }
 0x29a   :  { %1554 = vmatpush1.bf16.msra.mxu1 %v1392_v30  ;;  %v1427_v35 = vunpack.c.h.s8.bf16 %v1210_v63  ;;  %v1429_v19 = vunpack.c.h.s8.bf16 %v1212_v23  ;;  %v1435_v1 = vunpack.c.l.s8.bf16 %v1218_v47  ;;  %v1437_v15 = vunpack.c.l.s8.bf16 %v1220_v11  ;;  %v1116_v30 = vld [vmem:[%s3920_s3 + $0x20] sm:$0xff]  ;;  %v1130_v63 = vld [vmem:[%s3920_s3 + $0x90] sm:$0xff] }
 0x29b   :  { %1700 = vmatpush1.bf16.msra.mxu0 %v1394_v24  ;;  %1555 = vmatprep.subr.bf16.mxu1 %v1400_v26  ;;  %v1434_v41 = vunpack.c.l.s8.bf16 %v1217_v42  ;;  %v1436_v59 = vunpack.c.l.s8.bf16 %v1219_v16  ;;  %v1442_v50 = vunpack.c.h.s8.bf16 %v1218_v47  ;;  %v1444_v8 = vunpack.c.h.s8.bf16 %v1220_v11  ;;  %v1118_v24 = vld [vmem:[%s3920_s3 + $0x30] sm:$0xff]  ;;  %v1132_v23 = vld [vmem:[%s3920_s3 + $0xa0] sm:$0xff]  ;;  %v1167_v11 = vld [vmem:[%s3920_s3 + $0x1b8] sm:$0xff] }
 0x29c   :  { %1701 = vmatprep.subr.bf16.mxu0 %v1402_v28  ;;  %v1441_v49 = vunpack.c.h.s8.bf16 %v1217_v42  ;;  %v1443_v17 = vunpack.c.h.s8.bf16 %v1219_v16  ;;  %v1229_v54 = vunpack.c.l.s8.bf16 %v1117_v55  ;;  %v1286_v33 = vunpack.c.l.s8.bf16 %v1146_v37  ;;  %v1138_v47 = vld [vmem:[%s3920_s3 + $0xd0] sm:$0xff]  ;;  %v1137_v42 = vld [vmem:[%s3920_s3 + $0xc8] sm:$0xff]  ;;  %v1139_v16 = vld [vmem:[%s3920_s3 + $0xd8] sm:$0xff] }
 0x29d   :  { %v1228_v44 = vunpack.c.l.s8.bf16 %v1116_v30  ;;  %v1230_v26 = vunpack.c.l.s8.bf16 %v1118_v24  ;;  %v1236_v28 = vunpack.c.h.s8.bf16 %v1117_v55  ;;  %v1293_v58 = vunpack.c.h.s8.bf16 %v1146_v37  ;;  %v1145_v55 = vld [vmem:[%s3920_s3 + $0x108] sm:$0xff]  ;;  %v1202_v37 = vld [vmem:[%s3920_s3 + $0x2d0] sm:$0xff] }
 0x29e   :  { %1556 = vmatpush1.bf16.msra.mxu1 %v1399_v56  ;;  %v1235_v56 = vunpack.c.h.s8.bf16 %v1116_v30  ;;  %v1144_v30 = vld [vmem:[%s3920_s3 + $0x100] sm:$0xff]  ;;  %vm2222_vm2 = vcmask 130048  }
 0x29f   :  { %1702 = vmatpush1.bf16.msra.mxu0 %v1401_v38  ;;  %1557 = vmatprep.subr.bf16.mxu1 %v1407_v52  ;;  %v1237_v38 = vunpack.c.h.s8.bf16 %v1118_v24  ;;  %v1243_v52 = vunpack.c.l.s8.bf16 %v1124_v22  ;;  %v1174_v24 = vld [vmem:[%s3920_s3 + $0x1f0] sm:$0xff] }
 0x2a0   :  { %1703 = vmatprep.subr.bf16.mxu0 %v1409_v34  ;;  %v1300_v34 = vunpack.c.l.s8.bf16 %v1153_v39 }
 0x2a2   :  { %1558 = vmatpush1.bf16.msra.mxu1 %v1406_v20  ;;  %v1242_v20 = vunpack.c.l.s8.bf16 %v1123_v7 }
 0x2a3   :  { %1704 = vmatpush1.bf16.msra.mxu0 %v1408_v18  ;;  %1559 = vmatprep.subr.bf16.mxu1 %v1414_v27  ;;  %v1244_v18 = vunpack.c.l.s8.bf16 %v1125_v62  ;;  %v1250_v27 = vunpack.c.h.s8.bf16 %v1124_v22  ;;  %v1209_v22 = vld [vmem:[%s3920_s3 + $0x308] sm:$0xff] }
 0x2a4   :  { %1705 = vmatprep.subr.bf16.mxu0 %v1416_v3  ;;  %v1307_v3 = vunpack.c.h.s8.bf16 %v1153_v39  ;;  %v1291_v39 = vunpack.c.h.s8.bf16 %v1144_v30 }
 0x2a6   :  { %1560 = vmatpush1.bf16.msra.mxu1 %v1413_v51  ;;  %v1249_v51 = vunpack.c.h.s8.bf16 %v1123_v7  ;;  %v1181_v7 = vld [vmem:[%s3920_s3 + $0x228] sm:$0xff] }
 0x2a7   :  { %1706 = vmatpush1.bf16.msra.mxu0 %v1415_v6  ;;  %1561 = vmatprep.subr.bf16.mxu1 %v1421_v40  ;;  %v1251_v6 = vunpack.c.h.s8.bf16 %v1125_v62  ;;  %v1257_v40 = vunpack.c.l.s8.bf16 %v1131_v13 }
 0x2a8   :  { %1707 = vmatprep.subr.bf16.mxu0 %v1423_v9  ;;  %v1314_v9 = vunpack.c.l.s8.bf16 %v1160_v5 }
 0x2aa   :  { %1562 = vmatpush1.bf16.msra.mxu1 %v1420_v2  ;;  %v1256_v2 = vunpack.c.l.s8.bf16 %v1130_v63 }
 0x2ab   :  { %1708 = vmatpush1.bf16.msra.mxu0 %v1422_v57  ;;  %1563 = vmatprep.subr.bf16.mxu1 %v1428_v29  ;;  %v1258_v57 = vunpack.c.l.s8.bf16 %v1132_v23  ;;  %v1264_v29 = vunpack.c.h.s8.bf16 %v1131_v13  ;;  %v1216_v13 = vld [vmem:[%s3920_s3 + $0x340] sm:$0xff] }
 0x2ac   :  { %1709 = vmatprep.subr.bf16.mxu0 %v1430_v25  ;;  %v1321_v25 = vunpack.c.h.s8.bf16 %v1160_v5 }
 0x2ae   :  { %1564 = vmatpush1.bf16.msra.mxu1 %v1427_v35  ;;  %v1263_v35 = vunpack.c.h.s8.bf16 %v1130_v63  ;;  %v1188_v63 = vld [vmem:[%s3920_s3 + $0x260] sm:$0xff] }
 0x2af   :  { %1710 = vmatpush1.bf16.msra.mxu0 %v1429_v19  ;;  %1565 = vmatprep.subr.bf16.mxu1 %v1435_v1  ;;  %v1265_v19 = vunpack.c.h.s8.bf16 %v1132_v23  ;;  %v1271_v1 = vunpack.c.l.s8.bf16 %v1138_v47 }
 0x2b0   :  { %1711 = vmatprep.subr.bf16.mxu0 %v1437_v15  ;;  %v1328_v15 = vunpack.c.l.s8.bf16 %v1167_v11 }
 0x2b2   :  { %1566 = vmatpush1.bf16.msra.mxu1 %v1434_v41  ;;  %v1270_v41 = vunpack.c.l.s8.bf16 %v1137_v42 }
 0x2b3   :  { %1712 = vmatpush1.bf16.msra.mxu0 %v1436_v59  ;;  %1567 = vmatprep.subr.bf16.mxu1 %v1442_v50  ;;  %v1272_v59 = vunpack.c.l.s8.bf16 %v1139_v16  ;;  %v1278_v50 = vunpack.c.h.s8.bf16 %v1138_v47  ;;  %v1223_v47 = vld [vmem:[%s3920_s3 + $0x378] sm:$0xff] }
 0x2b4   :  { %1713 = vmatprep.subr.bf16.mxu0 %v1444_v8  ;;  %v1335_v8 = vunpack.c.h.s8.bf16 %v1167_v11 }
 0x2b6   :  { %1568 = vmatpush1.bf16.msra.mxu1 %v1441_v49  ;;  %v1277_v49 = vunpack.c.h.s8.bf16 %v1137_v42  ;;  %v1195_v42 = vld [vmem:[%s3920_s3 + $0x298] sm:$0xff] }
 0x2b7   :  { %1714 = vmatpush1.bf16.msra.mxu0 %v1443_v17  ;;  %1756 = vmatprep.subr.bf16.mxu1 %v1229_v54  ;;  %v1279_v17 = vunpack.c.h.s8.bf16 %v1139_v16  ;;  %v1285_v54 = vunpack.c.l.s8.bf16 %v1145_v55 }
 0x2b8   :  { %2304 = vmatprep.subr.bf16.mxu0 %v1286_v33  ;;  %v1398_v33 = vunpack.c.l.s8.bf16 %v1202_v37 }
 0x2b9   :  { %1570 = vmatmul.mubr.bf16.vlgmr.msra.gmra.mrb[16].mxu1 %v3460_v12 }
 0x2ba   :  { %1716 = vmatmul.mubr.bf16.vlgmr.msra.gmra.mrb[32].mxu0 %v3460_v12  ;;  %1579 = vmatprep.mubr.bf16.mxu1 %v3464_v21 }
 0x2bb   :  { %1725 = vmatprep.mubr.bf16.mxu0 %v3464_v21  ;;  %1757 = vmatpush1.bf16.msra.mxu1 %v1228_v44  ;;  %v1284_v44 = vunpack.c.l.s8.bf16 %v1144_v30  ;;  %v1180_v30 = vld [vmem:[%s3920_s3 + $0x220] sm:$0xff] }
 0x2bc   :  { %2305 = vmatpush3.bf16.msra.mxu0 %v1230_v26  ;;  %1758 = vmatprep.subr.bf16.mxu1 %v1236_v28  ;;  %v1292_v26 = vunpack.c.h.s8.bf16 %v1145_v55  ;;  %v1405_v28 = vunpack.c.h.s8.bf16 %v1202_v37  ;;  %v1391_v37 = vunpack.c.h.s8.bf16 %v1195_v42 }
 0x2bd   :  { %2306 = vmatprep.subr.bf16.mxu0 %v1293_v58  ;;  %v1152_v58 = vld [vmem:[%s3920_s3 + $0x140] sm:$0xff] }
 0x2bf   :  { %1759 = vmatpush1.bf16.msra.mxu1 %v1235_v56  ;;  %v1349_v56 = vunpack.c.h.s8.bf16 %v1174_v24 }
 0x2c0   :  { %2307 = vmatpush3.bf16.msra.mxu0 %v1237_v38  ;;  %1760 = vmatprep.subr.bf16.mxu1 %v1243_v52  ;;  %v1299_v38 = vunpack.c.l.s8.bf16 %v1152_v58  ;;  %v1151_v52 = vld [vmem:[%s3920_s3 + $0x138] sm:$0xff] }
 0x2c1   :  { %2308 = vmatprep.subr.bf16.mxu0 %v1300_v34  ;;  %1580 = vmatmul.mubr.bf16.gmra.mrb[20].mxu1 %v3482_v46  ;;  %v1412_v34 = vunpack.c.l.s8.bf16 %v1209_v22  ;;  %v1298_v62 = vunpack.c.l.s8.bf16 %v1151_v52  ;;  %v1305_v5 = vunpack.c.h.s8.bf16 %v1151_v52  ;;  %v1193_v52 = vld [vmem:[%s3920_s3 + $0x288] sm:$0xff] }
 0x2c2   :  { %1726 = vmatmul.mubr.bf16.gmra.mrb[36].mxu0 %v3482_v46  ;;  %1589 = vmatprep.mubr.bf16.mxu1 %v3501_v36 }
 0x2c3   :  { %1735 = vmatprep.mubr.bf16.mxu0 %v3501_v36  ;;  %1761 = vmatpush1.bf16.msra.mxu1 %v1242_v20  ;;  %v1356_v20 = vunpack.c.l.s8.bf16 %v1181_v7 }
 0x2c4   :  { %2309 = vmatpush3.bf16.msra.mxu0 %v1244_v18  ;;  %1762 = vmatprep.subr.bf16.mxu1 %v1250_v27  ;;  %v1306_v18 = vunpack.c.h.s8.bf16 %v1152_v58  ;;  %v1419_v27 = vunpack.c.h.s8.bf16 %v1209_v22  ;;  %v1186_v22 = vld [vmem:[%s3920_s3 + $0x250] sm:$0xff] }
 0x2c5   :  { %2310 = vmatprep.subr.bf16.mxu0 %v1307_v3  ;;  %v1159_v3 = vld [vmem:[%s3920_s3 + $0x178] sm:$0xff] }
 0x2c7   :  { %1763 = vmatpush1.bf16.msra.mxu1 %v1249_v51  ;;  %v1363_v51 = vunpack.c.h.s8.bf16 %v1181_v7  ;;  %v1389_v7 = vunpack.c.h.s8.bf16 %v1193_v52 }
 0x2c8   :  { %2311 = vmatpush3.bf16.msra.mxu0 %v1251_v6  ;;  %1764 = vmatprep.subr.bf16.mxu1 %v1257_v40  ;;  %v1313_v6 = vunpack.c.l.s8.bf16 %v1159_v3  ;;  %v1158_v40 = vld [vmem:[%s3920_s3 + $0x170] sm:$0xff] }
 0x2c9   :  { %2312 = vmatprep.subr.bf16.mxu0 %v1314_v9  ;;  %1590 = vmatmul.mubr.bf16.gmra.mrb[24].mxu1 %v3508_v43  ;;  %v1426_v9 = vunpack.c.l.s8.bf16 %v1216_v13  ;;  %v1312_v23 = vunpack.c.l.s8.bf16 %v1158_v40  ;;  %v1319_v11 = vunpack.c.h.s8.bf16 %v1158_v40 }
 0x2ca   :  { %1736 = vmatmul.mubr.bf16.gmra.mrb[40].mxu0 %v3508_v43  ;;  %1599 = vmatprep.mubr.bf16.mxu1 %v3520_v31 }
 0x2cb   :  { %1745 = vmatprep.mubr.bf16.mxu0 %v3520_v31  ;;  %1765 = vmatpush1.bf16.msra.mxu1 %v1256_v2  ;;  %v1370_v2 = vunpack.c.l.s8.bf16 %v1188_v63 }
 0x2cc   :  { %2313 = vmatpush3.bf16.msra.mxu0 %v1258_v57  ;;  %1766 = vmatprep.subr.bf16.mxu1 %v1264_v29  ;;  %v1320_v57 = vunpack.c.h.s8.bf16 %v1159_v3  ;;  %v1433_v29 = vunpack.c.h.s8.bf16 %v1216_v13  ;;  %v1207_v13 = vld [vmem:[%s3920_s3 + $0x2f8] sm:$0xff] }
 0x2cd   :  { %2314 = vmatprep.subr.bf16.mxu0 %v1321_v25  ;;  %v1166_v25 = vld [vmem:[%s3920_s3 + $0x1b0] sm:$0xff]  ;;  %v1417_v40 = vunpack.c.h.s8.bf16 %v1207_v13 }
 0x2cf   :  { %1767 = vmatpush1.bf16.msra.mxu1 %v1263_v35  ;;  %v1377_v35 = vunpack.c.h.s8.bf16 %v1188_v63  ;;  %v1214_v63 = vld [vmem:[%s3920_s3 + $0x330] sm:$0xff] }
 0x2d0   :  { %2315 = vmatpush3.bf16.msra.mxu0 %v1265_v19  ;;  %1768 = vmatprep.subr.bf16.mxu1 %v1271_v1  ;;  %v1327_v19 = vunpack.c.l.s8.bf16 %v1166_v25  ;;  %v1165_v1 = vld [vmem:[%s3920_s3 + $0x1a8] sm:$0xff] }
 0x2d1   :  { %2316 = vmatprep.subr.bf16.mxu0 %v1328_v15  ;;  %1600 = vmatmul.mubr.bf16.gmra.mrb[28].mxu1 %v3534_v14  ;;  %v1440_v15 = vunpack.c.l.s8.bf16 %v1223_v47  ;;  %v1326_v16 = vunpack.c.l.s8.bf16 %v1165_v1  ;;  %v1333_v55 = vunpack.c.h.s8.bf16 %v1165_v1  ;;  %v2293_v1 = vld [vmem:[%s3921_s4 + $0x6] ss:$8 sm:$0xf] }
 0x2d2   :  { %1746 = vmatmul.mubr.bf16.gmra.mrb[44].mxu0 %v3534_v14  ;;  %1788 = vmatprep.mubr.bf16.mxu1 %v3354_v60 }
 0x2d3   :  { %1934 = vmatprep.mubr.bf16.mxu0 %v3354_v60  ;;  %1769 = vmatpush1.bf16.msra.mxu1 %v1270_v41  ;;  %v1342_v60 = vunpack.c.l.s8.bf16 %v1174_v24  ;;  %v1384_v41 = vunpack.c.l.s8.bf16 %v1195_v42 }
 0x2d4   :  { %2317 = vmatpush3.bf16.msra.mxu0 %v1272_v59  ;;  %1770 = vmatprep.subr.bf16.mxu1 %v1278_v50  ;;  %v1334_v59 = vunpack.c.h.s8.bf16 %v1166_v25  ;;  %v1447_v50 = vunpack.c.h.s8.bf16 %v1223_v47  ;;  %v1221_v47 = vld [vmem:[%s3920_s3 + $0x368] sm:$0xff] }
 0x2d5   :  { %2318 = vmatprep.subr.bf16.mxu0 %v1335_v8  ;;  %v1173_v8 = vld [vmem:[%s3920_s3 + $0x1e8] sm:$0xff] }
 0x2d7   :  { %1771 = vmatpush1.bf16.msra.mxu1 %v1277_v49  ;;  %v1341_v49 = vunpack.c.l.s8.bf16 %v1173_v8 }
 0x2d8   :  { %2319 = vmatpush3.bf16.msra.mxu0 %v1279_v17  ;;  %1772 = vmatprep.subr.bf16.mxu1 %v1285_v54  ;;  %v1172_v17 = vld [vmem:[%s3920_s3 + $0x1e0] sm:$0xff] }
 0x2d9   :  { %2344 = vmatprep.subr.bf16.mxu0 %v1398_v33  ;;  %v1340_v54 = vunpack.c.l.s8.bf16 %v1172_v17  ;;  %v1348_v33 = vunpack.c.h.s8.bf16 %v1173_v8  ;;  %v1347_v24 = vunpack.c.h.s8.bf16 %v1172_v17 }
 0x2db   :  { %1935 = vmatmul.mubr.bf16.vlgmr.msra.gmra.mrb[48].mxu0 %v3357_v53  ;;  %1773 = vmatpush1.bf16.msra.mxu1 %v1284_v44  ;;  %v1355_v44 = vunpack.c.l.s8.bf16 %v1180_v30 }
 0x2dc   :  { %1942 = vmatprep.mubr.bf16.mxu0 %v3361_v61  ;;  %2345 = vmatpush3.bf16.msra.mxu0 %v1342_v60  ;;  %v1179_v60 = vld [vmem:[%s3920_s3 + $0x218] sm:$0xff] }
 0x2dd   :  { %1774 = vmatprep.subr.bf16.mxu1 %v1292_v26  ;;  %2346 = vmatprep.subr.bf16.mxu0 %v1405_v28  ;;  %v1362_v26 = vunpack.c.h.s8.bf16 %v1180_v30  ;;  %v1361_v28 = vunpack.c.h.s8.bf16 %v1179_v60 }
 0x2df   :  { %1775 = vmatpush1.bf16.msra.mxu1 %v1291_v39 }
 0x2e0   :  { %2347 = vmatpush3.bf16.msra.mxu0 %v1349_v56  ;;  %1776 = vmatprep.subr.bf16.mxu1 %v1299_v38  ;;  %v1375_v56 = vunpack.c.h.s8.bf16 %v1186_v22 }
 0x2e1   :  { %2348 = vmatprep.subr.bf16.mxu0 %v1412_v34 }
 0x2e3   :  { %1943 = vmatmul.mubr.bf16.gmra.mrb[52].mxu0 %v3379_v45  ;;  %1777 = vmatpush1.bf16.msra.mxu1 %v1298_v62 }
 0x2e4   :  { %1950 = vmatprep.mubr.bf16.mxu0 %v3395_v48  ;;  %2349 = vmatpush3.bf16.msra.mxu0 %v1356_v20  ;;  %v1200_v20 = vld [vmem:[%s3920_s3 + $0x2c0] sm:$0xff] }
 0x2e5   :  { %1778 = vmatprep.subr.bf16.mxu1 %v1306_v18  ;;  %2350 = vmatprep.subr.bf16.mxu0 %v1419_v27  ;;  %v1396_v18 = vunpack.c.l.s8.bf16 %v1200_v20  ;;  %v1208_v27 = vld [vmem:[%s3920_s3 + $0x300] sm:$0xff]  ;;  %v1403_v3 = vunpack.c.h.s8.bf16 %v1200_v20 }
 0x2e7   :  { %1779 = vmatpush1.bf16.msra.mxu1 %v1305_v5  ;;  %v1410_v5 = vunpack.c.l.s8.bf16 %v1207_v13 }
 0x2e8   :  { %2351 = vmatpush3.bf16.msra.mxu0 %v1363_v51  ;;  %1780 = vmatprep.subr.bf16.mxu1 %v1313_v6  ;;  %v1418_v51 = vunpack.c.h.s8.bf16 %v1208_v27  ;;  %v1215_v6 = vld [vmem:[%s3920_s3 + $0x338] sm:$0xff] }
 0x2e9   :  { %2352 = vmatprep.subr.bf16.mxu0 %v1426_v9  ;;  %v1425_v9 = vunpack.c.l.s8.bf16 %v1215_v6 }
 0x2eb   :  { %1951 = vmatmul.mubr.bf16.gmra.mrb[56].mxu0 %v3402_v4  ;;  %1781 = vmatpush1.bf16.msra.mxu1 %v1312_v23  ;;  %v1424_v23 = vunpack.c.l.s8.bf16 %v1214_v63 }
 0x2ec   :  { %1958 = vmatprep.mubr.bf16.mxu0 %v3421_v0  ;;  %2353 = vmatpush3.bf16.msra.mxu0 %v1370_v2  ;;  %v1432_v2 = vunpack.c.h.s8.bf16 %v1215_v6 }
 0x2ed   :  { %1782 = vmatprep.subr.bf16.mxu1 %v1320_v57  ;;  %2354 = vmatprep.subr.bf16.mxu0 %v1433_v29  ;;  %v1222_v57 = vld [vmem:[%s3920_s3 + $0x370] sm:$0xff]  ;;  %v1431_v29 = vunpack.c.h.s8.bf16 %v1214_v63 }
 0x2ee   :  { %v1439_v25 = vunpack.c.l.s8.bf16 %v1222_v57 }
 0x2ef   :  { %1783 = vmatpush1.bf16.msra.mxu1 %v1319_v11  ;;  %v1438_v11 = vunpack.c.l.s8.bf16 %v1221_v47 }
 0x2f0   :  { %2355 = vmatpush3.bf16.msra.mxu0 %v1377_v35  ;;  %1784 = vmatprep.subr.bf16.mxu1 %v1327_v19  ;;  %v1446_v35 = vunpack.c.h.s8.bf16 %v1222_v57  ;;  %v1445_v19 = vunpack.c.h.s8.bf16 %v1221_v47 }
 0x2f1   :  { %2356 = vmatprep.subr.bf16.mxu0 %v1440_v15  ;;  %v4001_v15 = vld [vmem:[#allocation8_spill] sm:$0xff] }
 0x2f3   :  { %1959 = vmatmul.mubr.bf16.gmra.mrb[60].mxu0 %v3431_v10  ;;  %1785 = vmatpush1.bf16.msra.mxu1 %v1326_v16  ;;  %v4002_v16 = vld [vmem:[#allocation7_spill] sm:$0xff] }
 0x2f4   :  { %1999 = vmatprep.mubr.bf16.mxu0 %v3445_v32  ;;  %2357 = vmatpush3.bf16.msra.mxu0 %v1384_v41 }
 0x2f5   :  { %1786 = vmatprep.subr.bf16.mxu1 %v1334_v59  ;;  %2358 = vmatprep.subr.bf16.mxu0 %v1447_v50  ;;  %v4003_v59 = vld [vmem:[#allocation9_spill] sm:$0xff] }
 0x2f7   :  { %1787 = vmatpush1.bf16.msra.mxu1 %v1333_v55 }
 0x2f8   :  { %2359 = vmatpush3.bf16.msra.mxu0 %v1391_v37  ;;  %1829 = vmatprep.subr.bf16.mxu1 %v1341_v49 }
 0x2fa   :  { %1789 = vmatmul.mubr.bf16.vlgmr.msra.gmra.mrb[32].mxu1 %v3357_v53  ;;  %v1354_v53 = vunpack.c.l.s8.bf16 %v1179_v60 }
 0x2fb   :  { %2000 = vmatmul.mubr.bf16.vlgmr.msra.gmra.mrb[64].mxu0 %v3460_v12  ;;  %1798 = vmatprep.mubr.bf16.mxu1 %v3361_v61  ;;  %v1187_v61 = vld [vmem:[%s3920_s3 + $0x258] sm:$0xff] }
 0x2fc   :  { %1830 = vmatpush1.bf16.msra.mxu1 %v1340_v54  ;;  %2007 = vmatprep.mubr.bf16.mxu0 %v3464_v21  ;;  %v1369_v58 = vunpack.c.l.s8.bf16 %v1187_v61  ;;  %v1376_v39 = vunpack.c.h.s8.bf16 %v1187_v61 }
 0x2fd   :  { %1831 = vmatprep.subr.bf16.mxu1 %v1348_v33 }
 0x300   :  { %1832 = vmatpush1.bf16.msra.mxu1 %v1347_v24 }
 0x301   :  { %1833 = vmatprep.subr.bf16.mxu1 %v1355_v44 }
 0x302   :  { %1799 = vmatmul.mubr.bf16.gmra.mrb[36].mxu1 %v3379_v45  ;;  %v1368_v45 = vunpack.c.l.s8.bf16 %v1186_v22 }
 0x303   :  { %2008 = vmatmul.mubr.bf16.gmra.mrb[68].mxu0 %v3482_v46  ;;  %1808 = vmatprep.mubr.bf16.mxu1 %v3395_v48  ;;  %v1194_v48 = vld [vmem:[%s3920_s3 + $0x290] sm:$0xff] }
 0x304   :  { %1834 = vmatpush1.bf16.msra.mxu1 %v1354_v53  ;;  %2015 = vmatprep.mubr.bf16.mxu0 %v3501_v36  ;;  %v1383_v38 = vunpack.c.l.s8.bf16 %v1194_v48  ;;  %v1390_v34 = vunpack.c.h.s8.bf16 %v1194_v48 }
 0x305   :  { %1835 = vmatprep.subr.bf16.mxu1 %v1362_v26 }
 0x308   :  { %1836 = vmatpush1.bf16.msra.mxu1 %v1361_v28 }
 0x309   :  { %1837 = vmatprep.subr.bf16.mxu1 %v1369_v58 }
 0x30a   :  { %1809 = vmatmul.mubr.bf16.gmra.mrb[40].mxu1 %v3402_v4  ;;  %v1382_v4 = vunpack.c.l.s8.bf16 %v1193_v52 }
 0x30b   :  { %2016 = vmatmul.mubr.bf16.gmra.mrb[72].mxu0 %v3508_v43  ;;  %1818 = vmatprep.mubr.bf16.mxu1 %v3421_v0  ;;  %v1201_v0 = vld [vmem:[%s3920_s3 + $0x2c8] sm:$0xff] }
 0x30c   :  { %1838 = vmatpush1.bf16.msra.mxu1 %v1368_v45  ;;  %2023 = vmatprep.mubr.bf16.mxu0 %v3520_v31  ;;  %v1397_v62 = vunpack.c.l.s8.bf16 %v1201_v0 }
 0x30d   :  { %1839 = vmatprep.subr.bf16.mxu1 %v1376_v39 }
 0x310   :  { %1840 = vmatpush1.bf16.msra.mxu1 %v1375_v56 }
 0x311   :  { %1841 = vmatprep.subr.bf16.mxu1 %v1383_v38 }
 0x312   :  { %1819 = vmatmul.mubr.bf16.gmra.mrb[44].mxu1 %v3431_v10  ;;  %v1404_v10 = vunpack.c.h.s8.bf16 %v1201_v0 }
 0x313   :  { %2024 = vmatmul.mubr.bf16.gmra.mrb[76].mxu0 %v3534_v14  ;;  %1861 = vmatprep.mubr.bf16.mxu1 %v3445_v32  ;;  %v1411_v32 = vunpack.c.l.s8.bf16 %v1208_v27 }
 0x314   :  { %1842 = vmatpush1.bf16.msra.mxu1 %v1382_v4 }
 0x315   :  { %1843 = vmatprep.subr.bf16.mxu1 %v1390_v34 }
 0x318   :  { %1844 = vmatpush1.bf16.msra.mxu1 %v1389_v7 }
 0x319   :  { %1845 = vmatprep.subr.bf16.mxu1 %v1397_v62 }
 0x31c   :  { %1846 = vmatpush1.bf16.msra.mxu1 %v1396_v18 }
 0x31d   :  { %1847 = vmatprep.subr.bf16.mxu1 %v1404_v10 }
 0x320   :  { %1848 = vmatpush1.bf16.msra.mxu1 %v1403_v3 }
 0x321   :  { %1849 = vmatprep.subr.bf16.mxu1 %v1411_v32 }
 0x324   :  { %1850 = vmatpush1.bf16.msra.mxu1 %v1410_v5 }
 0x325   :  { %1851 = vmatprep.subr.bf16.mxu1 %v1418_v51 }
 0x328   :  { %1852 = vmatpush1.bf16.msra.mxu1 %v1417_v40 }
 0x329   :  { %1853 = vmatprep.subr.bf16.mxu1 %v1425_v9 }
 0x32c   :  { %1854 = vmatpush1.bf16.msra.mxu1 %v1424_v23 }
 0x32d   :  { %1855 = vmatprep.subr.bf16.mxu1 %v1432_v2 }
 0x330   :  { %1856 = vmatpush1.bf16.msra.mxu1 %v1431_v29 }
 0x331   :  { %1857 = vmatprep.subr.bf16.mxu1 %v1439_v25 }
 0x334   :  { %1858 = vmatpush1.bf16.msra.mxu1 %v1438_v11 }
 0x335   :  { %1859 = vmatprep.subr.bf16.mxu1 %v1446_v35 }
 0x338   :  { %1860 = vmatpush1.bf16.msra.mxu1 %v1445_v19 }
 0x33b   :  { %1862 = vmatmul.mubr.bf16.vlgmr.msra.gmra.mrb[32].mxu1 %v3460_v12  ;;  %v2294_v12 = vld [vmem:[%s3921_s4 + $0x6] ss:$8 sm:$0x70] }
 0x33c   :  { %1871 = vmatprep.mubr.bf16.mxu1 %v3464_v21  ;;  %v2295_v21 = vld [vmem:[%s3921_s4 + $0x4] ss:$8 sm:$0xf] }
 0x343   :  { %1872 = vmatmul.mubr.bf16.gmra.mrb[36].mxu1 %v3482_v46  ;;  %v2296_v46 = vld [vmem:[%s3921_s4 + $0x4] ss:$8 sm:$0x70]  ;;  %s2478_s4 = smov [#allocation2]  }
 0x344   :  { %1881 = vmatprep.mubr.bf16.mxu1 %v3501_v36  ;;  %v3768_v36 = vor.u32 %v2294_v12, %v2293_v1  ;;  %s2278_s11 = sshll.u32 %s2478_s4, 4  ;;  %s2279_s11 = int_to_ptr.vmem [resolvable:$true] %s2278_s11 }
 0x345   :  { %s2452_s12 = scalar_lea.vmem %s2279_s11, 7168  ;;  %p2457_p1 = scmp.lt.s32.totalorder %s2279_s11, %s2279_s11 }
 0x346   :  { %v3778_v42 = vrot.slane %v3768_v36, %v4001_v15  ;;  %v3782_v41 = vrot.slane %v3768_v36, %v4002_v16  ;;  %v3786_v50 = vrot.slane %v3768_v36, %v4003_v59  ;;  %p2453_p0 = scmp.ne.s32.totalorder %s2279_s11, %s2452_s12  ;;  %p2458_p2 = scmp.lt.s32.totalorder %s2452_s12, %s2452_s12 }
 0x348   :  { %p2459_p3 = por %p2458_p2, %p2457_p1 }
 0x34a   :  { %p2460_p4 = pnand %p2459_p3, %p2453_p0 }
 0x34b   :  { %1882 = vmatmul.mubr.bf16.gmra.mrb[40].mxu1 %v3508_v43  ;;  %v3770_v43 = vor.u32 %v2296_v46, %v2295_v21 }
 0x34c   :  { %1891 = vmatprep.mubr.bf16.mxu1 %v3520_v31  ;;  %v4000_v31 = vld [vmem:[#allocation6_spill] sm:$0xff] }
 0x34d   :  { %v3790_v8 = vrot.slane %v3770_v43, %v4000_v31  ;;  %v3794_v55 = vrot.slane %v3770_v43, %v4001_v15  ;;  %v3798_v17 = vrot.slane %v3770_v43, %v4002_v16  ;;  %v3802_v54 = vrot.slane %v3770_v43, %v4003_v59 }
 0x353   :  { %1892 = vmatmul.mubr.bf16.gmra.mrb[44].mxu1 %v3534_v14  ;;  %v3774_v14 = vrot.slane %v3768_v36, %v4000_v31 }
 0x38c   :  { %v1571_v37 = vpop.f32.mrb[16].mxu1 }
 0x38d   :  { %v1717_v49 = vpop.f32.mrb[32].mxu0  ;;  %v2068_v33 = vmul.f32 %v3774_v14, %v1571_v37  ;;  %v1573_v24 = vpop.f32.mrb[17].mxu1 }
 0x38e   :  { %v2070_v30 = vmul.f32 %v3778_v42, %v1717_v49  ;;  %v1719_v44 = vpop.f32.mrb[33].mxu0  ;;  %v2069_v60 = vmul.f32 %v3782_v41, %v1573_v24  ;;  %v1575_v26 = vpop.f32.mrb[18].mxu1 }
 0x38f   :  { %v2071_v53 = vmul.f32 %v3786_v50, %v1719_v44  ;;  %v1721_v61 = vpop.f32.mrb[34].mxu0  ;;  %v2160_v28 = vadd.f32 %v3790_v8, %v2068_v33  ;;  %v2075_v22 = vmul.f32 %v3774_v14, %v1575_v26  ;;  %v1577_v39 = vpop.f32.mrb[19].mxu1 }
 0x390   :  { %v2162_v58 = vadd.f32 %v3794_v55, %v2070_v30  ;;  %v2077_v45 = vmul.f32 %v3778_v42, %v1721_v61  ;;  %v1723_v48 = vpop.f32.mrb[35].mxu0  ;;  %v2161_v56 = vadd.f32 %v3798_v17, %v2069_v60  ;;  %v2076_v52 = vmul.f32 %v3782_v41, %v1577_v39 }
 0x391   :  { %v2163_v38 = vadd.f32 %v3802_v54, %v2071_v53  ;;  %v2078_v4 = vmul.f32 %v3786_v50, %v1723_v48  ;;  %2216 = vst [vmem:[#allocation2] sm:$0xff] %v2160_v28  ;;  %v2167_v34 = vadd.f32 %v3790_v8, %v2075_v22 }
 0x392   :  { %2218 = vst [vmem:[#allocation2 + $0x10] sm:$0xff] %v2162_v58  ;;  %v2169_v0 = vadd.f32 %v3794_v55, %v2077_v45  ;;  %2217 = vst [vmem:[#allocation2 + $0x8] sm:$0xff] %v2161_v56  ;;  %v2168_v7 = vadd.f32 %v3798_v17, %v2076_v52 }
 0x393   :  { %2219 = vst [vmem:[#allocation2 + $0x18] sm:$0xff] %v2163_v38  ;;  %v2170_v62 = vadd.f32 %v3802_v54, %v2078_v4  ;;  %2224 = vst [vmem:[#allocation2 + $0x38] sm:$0xff] %v2167_v34 }
 0x394   :  { %2226 = vst [vmem:[#allocation2 + $0x48] sm:$0xff] %v2169_v0  ;;  %2225 = vst [vmem:[#allocation2 + $0x40] sm:$0xff] %v2168_v7  ;;  %v1581_v20 = vpop.f32.mrb[20].mxu1 }
 0x395   :  { %2227 = vst [vmem:[#allocation2 + $0x50] sm:$0xff] %v2170_v62  ;;  %v1727_v18 = vpop.f32.mrb[36].mxu0  ;;  %v2082_v10 = vmul.f32 %v3774_v14, %v1581_v20  ;;  %v1583_v3 = vpop.f32.mrb[21].mxu1 }
 0x396   :  { %v2084_v27 = vmul.f32 %v3778_v42, %v1727_v18  ;;  %v1729_v32 = vpop.f32.mrb[37].mxu0  ;;  %v2083_v13 = vmul.f32 %v3782_v41, %v1583_v3  ;;  %v1585_v51 = vpop.f32.mrb[22].mxu1 }
 0x397   :  { %v2085_v5 = vmul.f32 %v3786_v50, %v1729_v32  ;;  %v1731_v6 = vpop.f32.mrb[38].mxu0  ;;  %v2174_v40 = vadd.f32 %v3790_v8, %v2082_v10  ;;  %v2089_v63 = vmul.f32 %v3774_v14, %v1585_v51  ;;  %v1587_v2 = vpop.f32.mrb[23].mxu1 }
 0x398   :  { %v2176_v9 = vadd.f32 %v3794_v55, %v2084_v27  ;;  %v2091_v23 = vmul.f32 %v3778_v42, %v1731_v6  ;;  %v1733_v57 = vpop.f32.mrb[39].mxu0  ;;  %v2175_v29 = vadd.f32 %v3798_v17, %v2083_v13  ;;  %v2090_v47 = vmul.f32 %v3782_v41, %v1587_v2 }
 0x399   :  { %v2177_v25 = vadd.f32 %v3802_v54, %v2085_v5  ;;  %v2092_v11 = vmul.f32 %v3786_v50, %v1733_v57  ;;  %2231 = vst [vmem:[#allocation2 + $0x70] sm:$0xff] %v2174_v40  ;;  %v2181_v35 = vadd.f32 %v3790_v8, %v2089_v63 }
 0x39a   :  { %2233 = vst [vmem:[#allocation2 + $0x80] sm:$0xff] %v2176_v9  ;;  %v2183_v19 = vadd.f32 %v3794_v55, %v2091_v23  ;;  %2232 = vst [vmem:[#allocation2 + $0x78] sm:$0xff] %v2175_v29  ;;  %v2182_v1 = vadd.f32 %v3798_v17, %v2090_v47 }
 0x39b   :  { %2234 = vst [vmem:[#allocation2 + $0x88] sm:$0xff] %v2177_v25  ;;  %v2184_v12 = vadd.f32 %v3802_v54, %v2092_v11  ;;  %2238 = vst [vmem:[#allocation2 + $0xa8] sm:$0xff] %v2181_v35 }
 0x39c   :  { %2240 = vst [vmem:[#allocation2 + $0xb8] sm:$0xff] %v2183_v19  ;;  %2239 = vst [vmem:[#allocation2 + $0xb0] sm:$0xff] %v2182_v1  ;;  %v1591_v21 = vpop.f32.mrb[24].mxu1 }
 0x39d   :  { %2241 = vst [vmem:[#allocation2 + $0xc0] sm:$0xff] %v2184_v12  ;;  %v1737_v46 = vpop.f32.mrb[40].mxu0  ;;  %v2096_v31 = vmul.f32 %v3774_v14, %v1591_v21  ;;  %v1593_v16 = vpop.f32.mrb[25].mxu1 }
 0x39e   :  { %v2098_v15 = vmul.f32 %v3778_v42, %v1737_v46  ;;  %v1739_v59 = vpop.f32.mrb[41].mxu0  ;;  %v2097_v37 = vmul.f32 %v3782_v41, %v1593_v16  ;;  %v1595_v33 = vpop.f32.mrb[26].mxu1 }
 0x39f   :  { %v2099_v49 = vmul.f32 %v3786_v50, %v1739_v59  ;;  %v1741_v30 = vpop.f32.mrb[42].mxu0  ;;  %v2188_v24 = vadd.f32 %v3790_v8, %v2096_v31  ;;  %v2103_v60 = vmul.f32 %v3774_v14, %v1595_v33  ;;  %v1597_v26 = vpop.f32.mrb[27].mxu1 }
 0x3a0   :  { %v2190_v44 = vadd.f32 %v3794_v55, %v2098_v15  ;;  %v2105_v53 = vmul.f32 %v3778_v42, %v1741_v30  ;;  %v1743_v61 = vpop.f32.mrb[43].mxu0  ;;  %v2189_v28 = vadd.f32 %v3798_v17, %v2097_v37  ;;  %v2104_v22 = vmul.f32 %v3782_v41, %v1597_v26 }
 0x3a1   :  { %v2191_v58 = vadd.f32 %v3802_v54, %v2099_v49  ;;  %v2106_v45 = vmul.f32 %v3786_v50, %v1743_v61  ;;  %2245 = vst [vmem:[#allocation2 + $0xe0] sm:$0xff] %v2188_v24  ;;  %v2195_v39 = vadd.f32 %v3790_v8, %v2103_v60  ;;  %v4004_v24 = vld [vmem:[#allocation5_spill] sm:$0xff] }
 0x3a2   :  { %2247 = vst [vmem:[#allocation2 + $0xf0] sm:$0xff] %v2190_v44  ;;  %v2197_v48 = vadd.f32 %v3794_v55, %v2105_v53  ;;  %2246 = vst [vmem:[#allocation2 + $0xe8] sm:$0xff] %v2189_v28  ;;  %v2196_v56 = vadd.f32 %v3798_v17, %v2104_v22  ;;  %v2059_v44 = vsub.s32 6, %v4004_v24 }
 0x3a3   :  { %2248 = vst [vmem:[#allocation2 + $0xf8] sm:$0xff] %v2191_v58  ;;  %v2198_v38 = vadd.f32 %v3802_v54, %v2106_v45  ;;  %2252 = vst [vmem:[#allocation2 + $0x118] sm:$0xff] %v2195_v39 }
 0x3a4   :  { %2254 = vst [vmem:[#allocation2 + $0x128] sm:$0xff] %v2197_v48  ;;  %2253 = vst [vmem:[#allocation2 + $0x120] sm:$0xff] %v2196_v56  ;;  %v1601_v52 = vpop.f32.mrb[28].mxu1  ;;  %v2060_v61 = vrot.slane %v3768_v36, %v2059_v44  ;;  %v2152_v45 = vrot.slane %v3770_v43, %v2059_v44 }
 0x3a5   :  { %2255 = vst [vmem:[#allocation2 + $0x130] sm:$0xff] %v2198_v38  ;;  %v1747_v4 = vpop.f32.mrb[44].mxu0  ;;  %v2110_v34 = vmul.f32 %v3774_v14, %v1601_v52  ;;  %v1603_v7 = vpop.f32.mrb[29].mxu1 }
 0x3a6   :  { %v2112_v0 = vmul.f32 %v3778_v42, %v1747_v4  ;;  %v1749_v62 = vpop.f32.mrb[45].mxu0  ;;  %v2111_v20 = vmul.f32 %v3782_v41, %v1603_v7  ;;  %v1605_v10 = vpop.f32.mrb[30].mxu1 }
 0x3a7   :  { %v2113_v18 = vmul.f32 %v3786_v50, %v1749_v62  ;;  %v1751_v27 = vpop.f32.mrb[46].mxu0  ;;  %v2202_v3 = vadd.f32 %v3790_v8, %v2110_v34  ;;  %v2117_v13 = vmul.f32 %v3774_v14, %v1605_v10  ;;  %v1607_v51 = vpop.f32.mrb[31].mxu1 }
 0x3a8   :  { %v2204_v32 = vadd.f32 %v3794_v55, %v2112_v0  ;;  %v2119_v5 = vmul.f32 %v3778_v42, %v1751_v27  ;;  %v1753_v6 = vpop.f32.mrb[47].mxu0  ;;  %v2203_v40 = vadd.f32 %v3798_v17, %v2111_v20  ;;  %v2118_v63 = vmul.f32 %v3782_v41, %v1607_v51 }
 0x3a9   :  { %v2205_v9 = vadd.f32 %v3802_v54, %v2113_v18  ;;  %v2120_v23 = vmul.f32 %v3786_v50, %v1753_v6  ;;  %2259 = vst [vmem:[#allocation2 + $0x150] sm:$0xff] %v2202_v3  ;;  %v2209_v2 = vadd.f32 %v3790_v8, %v2117_v13 }
 0x3aa   :  { %2261 = vst [vmem:[#allocation2 + $0x160] sm:$0xff] %v2204_v32  ;;  %v2211_v57 = vadd.f32 %v3794_v55, %v2119_v5  ;;  %2260 = vst [vmem:[#allocation2 + $0x158] sm:$0xff] %v2203_v40  ;;  %v2210_v14 = vadd.f32 %v3798_v17, %v2118_v63 }
 0x3ab   :  { %2262 = vst [vmem:[#allocation2 + $0x168] sm:$0xff] %v2205_v9  ;;  %v2212_v42 = vadd.f32 %v3802_v54, %v2120_v23  ;;  %2266 = vst [vmem:[#allocation2 + $0x188] sm:$0xff] %v2209_v2 }
 0x3ac   :  { %2268 = vst [vmem:[#allocation2 + $0x198] sm:$0xff] %v2211_v57  ;;  %2267 = vst [vmem:[#allocation2 + $0x190] sm:$0xff] %v2210_v14 }
 0x3ad   :  { %2269 = vst [vmem:[#allocation2 + $0x1a0] sm:$0xff] %v2212_v42 }
 0x3ae   :  { %v2320_v29 = vpop.f32.mrb[48].mxu0 }
 0x3af   :  { %v2321_v41 = vpop.f32.mrb[49].mxu0 }
 0x3b0   :  { %v2322_v25 = vadd.f32 %v2321_v41, %v2320_v29  ;;  %v2323_v50 = vpop.f32.mrb[50].mxu0 }
 0x3b1   :  { %v2324_v47 = vpop.f32.mrb[51].mxu0 }
 0x3b2   :  { %v2325_v11 = vadd.f32 %v2324_v47, %v2323_v50 }
 0x3b6   :  { %v2326_v35 = vpop.f32.mrb[52].mxu0 }
 0x3b7   :  { %v2327_v8 = vpop.f32.mrb[53].mxu0 }
 0x3b8   :  { %v2328_v19 = vadd.f32 %v2327_v8, %v2326_v35  ;;  %v2329_v55 = vpop.f32.mrb[54].mxu0 }
 0x3b9   :  { %v2330_v1 = vpop.f32.mrb[55].mxu0 }
 0x3ba   :  { %v2331_v12 = vadd.f32 %v2330_v1, %v2329_v55 }
 0x3be   :  { %v2332_v21 = vpop.f32.mrb[56].mxu0 }
 0x3bf   :  { %v2333_v17 = vpop.f32.mrb[57].mxu0 }
 0x3c0   :  { %v2334_v46 = vadd.f32 %v2333_v17, %v2332_v21  ;;  %v2335_v54 = vpop.f32.mrb[58].mxu0 }
 0x3c1   :  { %v2336_v31 = vpop.f32.mrb[59].mxu0 }
 0x3c2   :  { %v2337_v15 = vadd.f32 %v2336_v31, %v2335_v54  ;;  %v2055_v54 = vsub.s32 5, %v4004_v24 }
 0x3c6   :  { %v2338_v16 = vpop.f32.mrb[60].mxu0 }
 0x3c7   :  { %v2339_v59 = vpop.f32.mrb[61].mxu0 }
 0x3c8   :  { %v2340_v37 = vadd.f32 %v2339_v59, %v2338_v16  ;;  %v2341_v49 = vpop.f32.mrb[62].mxu0 }
 0x3c9   :  { %v2342_v33 = vpop.f32.mrb[63].mxu0 }
 0x3ca   :  { %v2343_v30 = vadd.f32 %v2342_v33, %v2341_v49 }
 0x3ce   :  { %v2360_v60 = vpop.f32.mrb[64].mxu0 }
 0x3cf   :  { %v2361_v53 = vpop.f32.mrb[65].mxu0 }
 0x3d0   :  { %v2362_v26 = vadd.f32 %v2361_v53, %v2360_v60  ;;  %v2363_v28 = vpop.f32.mrb[66].mxu0 }
 0x3d1   :  { %v2364_v58 = vpop.f32.mrb[67].mxu0 }
 0x3d2   :  { %v2002_v22 = vadd.f32 %v2362_v26, %v2322_v25  ;;  %v2365_v39 = vadd.f32 %v2364_v58, %v2363_v28 }
 0x3d4   :  { %v2074_v48 = vmul.f32 %v2060_v61, %v2002_v22  ;;  %v2005_v56 = vadd.f32 %v2365_v39, %v2325_v11 }
 0x3d6   :  { %v2166_v38 = vadd.f32 %v2152_v45, %v2074_v48  ;;  %v2081_v52 = vmul.f32 %v2060_v61, %v2005_v56  ;;  %v2366_v4 = vpop.f32.mrb[68].mxu0 }
 0x3d7   :  { %v2367_v34 = vpop.f32.mrb[69].mxu0 }
 0x3d8   :  { %2223 = vst.msk [vmem:[#allocation2 + $0x30] sm:$0xff] %vm2222_vm2, %v2166_v38  ;;  %v2173_v0 = vadd.f32 %v2152_v45, %v2081_v52  ;;  %v2368_v7 = vadd.f32 %v2367_v34, %v2366_v4  ;;  %v2369_v62 = vpop.f32.mrb[70].mxu0 }
 0x3d9   :  { %v2370_v20 = vpop.f32.mrb[71].mxu0 }
 0x3da   :  { %2230 = vst.msk [vmem:[#allocation2 + $0x68] sm:$0xff] %vm2222_vm2, %v2173_v0  ;;  %v2010_v18 = vadd.f32 %v2368_v7, %v2328_v19  ;;  %v2371_v10 = vadd.f32 %v2370_v20, %v2369_v62 }
 0x3dc   :  { %v2088_v27 = vmul.f32 %v2060_v61, %v2010_v18  ;;  %v2013_v3 = vadd.f32 %v2371_v10, %v2331_v12 }
 0x3de   :  { %v2180_v32 = vadd.f32 %v2152_v45, %v2088_v27  ;;  %v2095_v13 = vmul.f32 %v2060_v61, %v2013_v3  ;;  %v2372_v5 = vpop.f32.mrb[72].mxu0 }
 0x3df   :  { %v2373_v51 = vpop.f32.mrb[73].mxu0 }
 0x3e0   :  { %2237 = vst.msk [vmem:[#allocation2 + $0xa0] sm:$0xff] %vm2222_vm2, %v2180_v32  ;;  %v2187_v6 = vadd.f32 %v2152_v45, %v2095_v13  ;;  %v2374_v40 = vadd.f32 %v2373_v51, %v2372_v5  ;;  %v2375_v9 = vpop.f32.mrb[74].mxu0 }
 0x3e1   :  { %v2376_v63 = vpop.f32.mrb[75].mxu0 }
 0x3e2   :  { %2244 = vst.msk [vmem:[#allocation2 + $0xd8] sm:$0xff] %vm2222_vm2, %v2187_v6  ;;  %v2018_v23 = vadd.f32 %v2374_v40, %v2334_v46  ;;  %v2377_v2 = vadd.f32 %v2376_v63, %v2375_v9  ;;  %v2051_v46 = vsub.s32 4, %v4004_v24 }
 0x3e4   :  { %v2102_v57 = vmul.f32 %v2060_v61, %v2018_v23  ;;  %v2021_v14 = vadd.f32 %v2377_v2, %v2337_v15  ;;  %v2052_v31 = vrot.slane %v3768_v36, %v2051_v46  ;;  %v2056_v15 = vrot.slane %v3768_v36, %v2055_v54 }
 0x3e5   :  { %v3884_v16 = vrot.slane %v3770_v43, %v2051_v46 }
 0x3e6   :  { %v2194_v42 = vadd.f32 %v2152_v45, %v2102_v57  ;;  %v2109_v29 = vmul.f32 %v2060_v61, %v2021_v14  ;;  %v2378_v41 = vpop.f32.mrb[76].mxu0 }
 0x3e7   :  { %v2379_v25 = vpop.f32.mrb[77].mxu0 }
 0x3e8   :  { %2251 = vst.msk [vmem:[#allocation2 + $0x110] sm:$0xff] %vm2222_vm2, %v2194_v42  ;;  %v2201_v50 = vadd.f32 %v2152_v45, %v2109_v29  ;;  %v2380_v47 = vadd.f32 %v2379_v25, %v2378_v41  ;;  %v2381_v11 = vpop.f32.mrb[78].mxu0 }
 0x3e9   :  { %v2382_v35 = vpop.f32.mrb[79].mxu0 }
 0x3ea   :  { %2258 = vst.msk [vmem:[#allocation2 + $0x148] sm:$0xff] %vm2222_vm2, %v2201_v50  ;;  %v2026_v8 = vadd.f32 %v2380_v47, %v2340_v37  ;;  %v2383_v19 = vadd.f32 %v2382_v35, %v2381_v11  ;;  %v3887_v37 = vrot.slane %v3770_v43, %v2055_v54 }
 0x3ec   :  { %v2116_v55 = vmul.f32 %v2060_v61, %v2026_v8  ;;  %v2029_v1 = vadd.f32 %v2383_v19, %v2343_v30 }
 0x3ee   :  { %v2208_v12 = vadd.f32 %v2152_v45, %v2116_v55  ;;  %v2123_v21 = vmul.f32 %v2060_v61, %v2029_v1 }
 0x3f0   :  { %2265 = vst.msk [vmem:[#allocation2 + $0x180] sm:$0xff] %vm2222_vm2, %v2208_v12  ;;  %v2215_v17 = vadd.f32 %v2152_v45, %v2123_v21 }
 0x3f2   :  { %2272 = vst.msk [vmem:[#allocation2 + $0x1b8] sm:$0xff] %vm2222_vm2, %v2215_v17 }
 0x40e   :  { %v1863_v59 = vpop.f32.mrb[32].mxu1 }
 0x40f   :  { %v2072_v49 = vmul.f32 %v2052_v31, %v1863_v59  ;;  %v1865_v33 = vpop.f32.mrb[33].mxu1 }
 0x410   :  { %v2073_v30 = vmul.f32 %v2056_v15, %v1865_v33  ;;  %v1867_v44 = vpop.f32.mrb[34].mxu1 }
 0x411   :  { %v2164_v60 = vadd.f32 %v3884_v16, %v2072_v49  ;;  %v2079_v53 = vmul.f32 %v2052_v31, %v1867_v44  ;;  %v1869_v26 = vpop.f32.mrb[35].mxu1 }
 0x412   :  { %v2165_v24 = vadd.f32 %v3887_v37, %v2073_v30  ;;  %v2080_v61 = vmul.f32 %v2056_v15, %v1869_v26 }
 0x413   :  { %2220 = vst [vmem:[#allocation2 + $0x20] sm:$0xff] %v2164_v60  ;;  %v2171_v36 = vadd.f32 %v3884_v16, %v2079_v53 }
 0x414   :  { %2221 = vst [vmem:[#allocation2 + $0x28] sm:$0xff] %v2165_v24  ;;  %v2172_v28 = vadd.f32 %v3887_v37, %v2080_v61 }
 0x415   :  { %2228 = vst [vmem:[#allocation2 + $0x58] sm:$0xff] %v2171_v36 }
 0x416   :  { %2229 = vst [vmem:[#allocation2 + $0x60] sm:$0xff] %v2172_v28  ;;  %v1873_v43 = vpop.f32.mrb[36].mxu1 }
 0x417   :  { %v2086_v58 = vmul.f32 %v2052_v31, %v1873_v43  ;;  %v1875_v22 = vpop.f32.mrb[37].mxu1 }
 0x418   :  { %v2087_v45 = vmul.f32 %v2056_v15, %v1875_v22  ;;  %v1877_v39 = vpop.f32.mrb[38].mxu1 }
 0x419   :  { %v2178_v48 = vadd.f32 %v3884_v16, %v2086_v58  ;;  %v2093_v56 = vmul.f32 %v2052_v31, %v1877_v39  ;;  %v1879_v38 = vpop.f32.mrb[39].mxu1 }
 0x41a   :  { %v2179_v52 = vadd.f32 %v3887_v37, %v2087_v45  ;;  %v2094_v4 = vmul.f32 %v2056_v15, %v1879_v38 }
 0x41b   :  { %2235 = vst [vmem:[#allocation2 + $0x90] sm:$0xff] %v2178_v48  ;;  %v2185_v34 = vadd.f32 %v3884_v16, %v2093_v56 }
 0x41c   :  { %2236 = vst [vmem:[#allocation2 + $0x98] sm:$0xff] %v2179_v52  ;;  %v2186_v0 = vadd.f32 %v3887_v37, %v2094_v4 }
 0x41d   :  { %2242 = vst [vmem:[#allocation2 + $0xc8] sm:$0xff] %v2185_v34 }
 0x41e   :  { %2243 = vst [vmem:[#allocation2 + $0xd0] sm:$0xff] %v2186_v0  ;;  %v1883_v7 = vpop.f32.mrb[40].mxu1 }
 0x41f   :  { %v2100_v62 = vmul.f32 %v2052_v31, %v1883_v7  ;;  %v1885_v20 = vpop.f32.mrb[41].mxu1 }
 0x420   :  { %v2101_v18 = vmul.f32 %v2056_v15, %v1885_v20  ;;  %v1887_v10 = vpop.f32.mrb[42].mxu1 }
 0x421   :  { %v2192_v27 = vadd.f32 %v3884_v16, %v2100_v62  ;;  %v2107_v3 = vmul.f32 %v2052_v31, %v1887_v10  ;;  %v1889_v32 = vpop.f32.mrb[43].mxu1 }
 0x422   :  { %v2193_v13 = vadd.f32 %v3887_v37, %v2101_v18  ;;  %v2108_v5 = vmul.f32 %v2056_v15, %v1889_v32 }
 0x423   :  { %2249 = vst [vmem:[#allocation2 + $0x100] sm:$0xff] %v2192_v27  ;;  %v2199_v51 = vadd.f32 %v3884_v16, %v2107_v3 }
 0x424   :  { %2250 = vst [vmem:[#allocation2 + $0x108] sm:$0xff] %v2193_v13  ;;  %v2200_v6 = vadd.f32 %v3887_v37, %v2108_v5 }
 0x425   :  { %2256 = vst [vmem:[#allocation2 + $0x138] sm:$0xff] %v2199_v51 }
 0x426   :  { %2257 = vst [vmem:[#allocation2 + $0x140] sm:$0xff] %v2200_v6  ;;  %v1893_v40 = vpop.f32.mrb[44].mxu1 }
 0x427   :  { %v2114_v9 = vmul.f32 %v2052_v31, %v1893_v40  ;;  %v1895_v63 = vpop.f32.mrb[45].mxu1 }
 0x428   :  { %v2115_v23 = vmul.f32 %v2056_v15, %v1895_v63  ;;  %v1897_v2 = vpop.f32.mrb[46].mxu1 }
 0x429   :  { %v2206_v57 = vadd.f32 %v3884_v16, %v2114_v9  ;;  %v2121_v14 = vmul.f32 %v2052_v31, %v1897_v2  ;;  %v1899_v42 = vpop.f32.mrb[47].mxu1 }
 0x42a   :  { %v2207_v29 = vadd.f32 %v3887_v37, %v2115_v23  ;;  %v2122_v41 = vmul.f32 %v2056_v15, %v1899_v42 }
 0x42b   :  { %2263 = vst [vmem:[#allocation2 + $0x170] sm:$0xff] %v2206_v57  ;;  %v2213_v25 = vadd.f32 %v3884_v16, %v2121_v14 }
 0x42c   :  { %2264 = vst [vmem:[#allocation2 + $0x178] sm:$0xff] %v2207_v29  ;;  %v2214_v50 = vadd.f32 %v3887_v37, %v2122_v41 }
 0x42d   :  { %2270 = vst [vmem:[#allocation2 + $0x1a8] sm:$0xff] %v2213_v25 }
 0x42e   :  { %2271 = vst [vmem:[#allocation2 + $0x1b0] sm:$0xff] %v2214_v50 }
 0x42f   :  { %2463 = shalt.err (!%p2460_p4)
}
 0x430   :  { %s2464_s15 = scalar_lea.hbm %s3922_s5, 7168 }
 0x431   :  { %p2465_p5 = scmp.ne.s32.totalorder %s3922_s5, %s2464_s15  ;;  %p2468_p6 = scmp.lt.u32.totalorder %s2464_s15, %s3922_s5 }
 0x433   :  { %p2470_p7 = pnand %p2468_p6, %p2465_p5 }
 0x435   :  { %2473 = shalt.err (!%p2470_p7)
}
 0x436   :  { %s2479_s0 = smov 896   ;;  %s2480_s20 = smov 56  }
 0x437   :  { %2284 = dma.vmem_to_hbm [thread:$0]  %s2279_s11, 7168, %s3922_s5, [#allocation3], %s2479_s0, %s2479_s0, %s2480_s20  }
 0x438   :  { %2474 = dma.done.wait [#allocation3], 7168  }
 0x439   :  { %2475 = vsyncadd [#allocation3], 4294960128 }
 0x43a   :  { %2288 = vsyncpa [#allocation3], 1 }

</bundles_post_ra>
